<compile_context>
chip_gen: v5e
topology: v5e:2x2
jax: 0.10.0
libtpu: 0.0.40
codegen_flags: <defaults>
</compile_context>

<pallas_src>
import functools

import jax
import jax.numpy as jnp
from jax.experimental import pallas as pl
from jax.experimental.pallas import tpu as pltpu

LANE_PAD = 128  # lane-dense width for the FC matmuls and the kernel output


# --------------------------- weight repacking (host/XLA, one-time) ----------


def _conv_toeplitz_split(w_oihw, in_w):
    """Block-Toeplitz matrices that turn a valid conv into KH shifted matmuls.

    Returns (t_even, t_odd), each (KH, IC*in_w, OC*PW) with PW = (in_w-KW+1)//2:
        t[di][ic*in_w + w', oc*PW + pw] = w[oc, ic, di, w' - ow],  ow = 2*pw(+1)
    so that  sum_di  X[di:di+OH, :] @ t[di]  yields the conv output for the
    even / odd output x-positions, already laid out as [oh, oc*PW + pw]
    (exactly the layout the fused 2x2 max-pool wants).
    """
    oc, ic, kh, kw = w_oihw.shape
    ow_full = in_w - kw + 1
    pw = ow_full // 2
    wt = jnp.transpose(w_oihw, (2, 1, 0, 3))            # (KH, IC, OC, KW)

    def build(parity):
        wprime = jnp.arange(in_w)[:, None]              # (in_w, 1)
        ow = 2 * jnp.arange(pw)[None, :] + parity       # (1, PW)
        dj = wprime - ow                                # (in_w, PW)
        valid = (dj >= 0) & (dj < kw)
        dj = jnp.clip(dj, 0, kw - 1)
        g = wt[:, :, :, dj]                             # (KH, IC, OC, in_w, PW)
        g = g * valid[None, None, None].astype(wt.dtype)
        g = jnp.transpose(g, (0, 1, 3, 2, 4))           # (KH, IC, in_w, OC, PW)
        return g.reshape(kh, ic * in_w, oc * pw)

    return build(0), build(1)


def _pool_row_select(n_rows):
    """0/1 matrices S_e, S_o with (S_e @ A)[a] = A[2a], (S_o @ A)[a] = A[2a+1]."""
    half = n_rows // 2
    rows = jnp.arange(half)[:, None]
    cols = jnp.arange(n_rows)[None, :]
    s_e = (cols == 2 * rows).astype(jnp.float32)
    s_o = (cols == 2 * rows + 1).astype(jnp.float32)
    return s_e, s_o


def pack_params(params, image_hw=(32, 32)):
    """One-time repack of the PyTorch-layout parameters for the fused kernel."""
    w1, b1, w2, b2, fw1, fb1, fw2, fb2, fw3, fb3 = params
    h, w = image_hw
    oc1, ic1, kh1, kw1 = w1.shape                       # (6, 3, 5, 5)
    oc2, _, kh2, kw2 = w2.shape                         # (16, 6, 5, 5)
    oh1, ow1 = h - kh1 + 1, w - kw1 + 1                 # 28, 28
    ph1, pw1 = oh1 // 2, ow1 // 2                       # 14, 14
    oh2, ow2 = ph1 - kh2 + 1, pw1 - kw2 + 1             # 10, 10
    ph2, pw2 = oh2 // 2, ow2 // 2                       # 5, 5

    t1e, t1o = _conv_toeplitz_split(w1, w)              # (5, 96, 84) each
    t2e, t2o = _conv_toeplitz_split(w2, pw1)            # (5, 84, 80) each
    b1r = jnp.repeat(b1, pw1)[None, :]                  # (1, 84)  [oc*PW+pw]
    b2r = jnp.repeat(b2, pw2)[None, :]                  # (1, 80)
    se1, so1 = _pool_row_select(oh1)                    # (14, 28)
    se2, so2 = _pool_row_select(oh2)                    # (5, 10)

    # fc1: fold torch's view(-1, 16*5*5) (C,H,W order) into a row permutation
    # of the weight, and zero-pad every fc output width to LANE_PAD lanes.
    f1 = fw1.shape[1]                                   # 120
    fw1p = jnp.transpose(fw1.reshape(oc2, ph2, pw2, f1), (1, 0, 2, 3))
    fw1p = fw1p.reshape(ph2, oc2 * pw2, f1)             # [ph, oc*PW+pw, n]
    fw1p = jnp.pad(fw1p, ((0, 0), (0, 0), (0, LANE_PAD - f1)))
    fb1p = jnp.pad(fb1, (0, LANE_PAD - f1))[None, :]
    f2 = fw2.shape[1]                                   # 84
    fw2p = jnp.pad(fw2, ((0, LANE_PAD - fw2.shape[0]), (0, LANE_PAD - f2)))
    fb2p = jnp.pad(fb2, (0, LANE_PAD - f2))[None, :]
    f3 = fw3.shape[1]                                   # output_size
    fw3p = jnp.pad(fw3, ((0, LANE_PAD - fw3.shape[0]), (0, LANE_PAD - f3)))
    fb3p = jnp.pad(fb3, (0, LANE_PAD - f3))[None, :]

    return (t1e, t1o, b1r, se1, so1, t2e, t2o, b2r, se2, so2,
            fw1p, fb1p, fw2p, fb2p, fw3p, fb3p)


# --------------------------------- kernel -----------------------------------


def _convnet_kernel(x_ref, t1e_ref, t1o_ref, b1_ref, se1_ref, so1_ref,
                    t2e_ref, t2o_ref, b2_ref, se2_ref, so2_ref,
                    fw1_ref, fb1_ref, fw2_ref, fb2_ref, fw3_ref, fb3_ref,
                    out_ref):
    f32 = jnp.float32

    def conv_relu_pool(x, te_ref, to_ref, b_ref, se_ref, so_ref):
        # x: (in_h, IC*in_w).  Conv (KH shifted MXU matmuls) + bias + ReLU with
        # the 2x2 max-pool fused: width pool = max of even/odd accumulators,
        # height pool = max of two 0/1 row-selection matmuls.
        kh = te_ref.shape[0]
        oh = se_ref.shape[1]
        acc_e = acc_o = None
        for di in range(kh):                           # unrolled, static slices
            xs = x[di:di + oh, :]
            pe = jnp.dot(xs, te_ref[di], preferred_element_type=f32)
            po = jnp.dot(xs, to_ref[di], preferred_element_type=f32)
            acc_e = pe if acc_e is None else acc_e + pe
            acc_o = po if acc_o is None else acc_o + po
        bias = b_ref[...]                              # read once, reused
        r_e = jnp.maximum(acc_e + bias, 0.0)
        r_o = jnp.maximum(acc_o + bias, 0.0)
        wide = jnp.maximum(r_e, r_o)                   # (OH, OC*PW) width-pooled
        return jnp.maximum(                            # (OH//2, OC*PW)
            jnp.dot(se_ref[...], wide, preferred_element_type=f32),
            jnp.dot(so_ref[...], wide, preferred_element_type=f32))

    x = x_ref[0]                                       # (32, 3*32)
    p1 = conv_relu_pool(x, t1e_ref, t1o_ref, b1_ref, se1_ref, so1_ref)   # (14, 84)
    p2 = conv_relu_pool(p1, t2e_ref, t2o_ref, b2_ref, se2_ref, so2_ref)  # (5, 80)

    # fc1: torch flatten order already lives in fw1's permutation; contract
    # over (ph, oc*5+pw) as 5 accumulated row x matrix products.
    acc = fb1_ref[...]                                 # (1, 128)
    for ph in range(fw1_ref.shape[0]):
        acc = acc + jnp.dot(p2[ph:ph + 1, :], fw1_ref[ph],
                            preferred_element_type=f32)
    l1 = jnp.maximum(acc, 0.0)
    l2 = jnp.maximum(
        jnp.dot(l1, fw2_ref[...], preferred_element_type=f32) + fb2_ref[...],
        0.0)
    out_ref[0] = (jnp.dot(l2, fw3_ref[...], preferred_element_type=f32)
                  + fb3_ref[...])                      # lane-dense (1, 128) store


# --------------------------------- wrapper ----------------------------------


def convnet_forward(x_nchw, packed, *, num_classes):
    n, c, h, w = x_nchw.shape
    # NCHW -> (N, H, C*W): rows = image rows, lanes = channel-major pixels.
    x_rows = jnp.transpose(x_nchw, (0, 2, 1, 3)).reshape(n, h, c * w)

    in_specs = [pl.BlockSpec((1, h, c * w), lambda b: (b, 0, 0))]
    for arr in packed:  # weights: full-array blocks, resident across the grid
        in_specs.append(pl.BlockSpec(arr.shape, lambda b, _nd=arr.ndim: (0,) * _nd))

    out = pl.pallas_call(
        _convnet_kernel,
        grid=(n,),
        in_specs=in_specs,
        out_specs=pl.BlockSpec((1, 1, LANE_PAD), lambda b: (b, 0, 0)),
        out_shape=jax.ShapeDtypeStruct((n, 1, LANE_PAD), jnp.float32),
        compiler_params=pltpu.CompilerParams(
            dimension_semantics=("parallel",)),
    )(x_rows, *packed)
    return out.reshape(n, LANE_PAD)[:, :num_classes]


# ----------------------- pure-JAX reference (sanity check) ------------------


def reference_forward(x_nchw, params):
    w1, b1, w2, b2, fw1, fb1, fw2, fb2, fw3, fb3 = params

    def conv(x, w, b):
        y = jax.lax.conv_general_dilated(
            x, w, (1, 1), "VALID", dimension_numbers=("NCHW", "OIHW", "NCHW"))
        return jax.nn.relu(y + b[None, :, None, None])

    def pool(x):
        return jax.lax.reduce_window(x, -jnp.inf, jax.lax.max,
                                     (1, 1, 2, 2), (1, 1, 2, 2), "VALID")

    h1 = pool(conv(x_nchw, w1, b1))
    h2 = pool(conv(h1, w2, b2))
    flat = h2.reshape(h2.shape[0], -1)                 # torch view(-1, 16*5*5)
    l1 = jax.nn.relu(flat @ fw1 + fb1)
    l2 = jax.nn.relu(l1 @ fw2 + fb2)
    return l2 @ fw3 + fb3


# ----------------------------------- main ------------------------------------


if __name__ == "__main__":
    output_size = 10
    key = jax.random.PRNGKey(0)
    ks = jax.random.split(key, 11)

    def uni(k, shape, fan_in):
        bound = 1.0 / float(fan_in) ** 0.5
        return jax.random.uniform(k, shape, jnp.float32, -bound, bound)

    # deterministic synthetic parameters (PyTorch-style uniform fan-in bounds)
    w1 = uni(ks[1], (6, 3, 5, 5), 3 * 5 * 5)
    b1 = uni(ks[2], (6,), 3 * 5 * 5)
    w2 = uni(ks[3], (16, 6, 5, 5), 6 * 5 * 5)
    b2 = uni(ks[4], (16,), 6 * 5 * 5)
    fw1 = uni(ks[5], (16 * 5 * 5, 120), 16 * 5 * 5)
    fb1 = uni(ks[6], (120,), 16 * 5 * 5)
    fw2 = uni(ks[7], (120, 84), 120)
    fb2 = uni(ks[8], (84,), 120)
    fw3 = uni(ks[9], (84, output_size), 84)
    fb3 = uni(ks[10], (output_size,), 84)
    params = (w1, b1, w2, b2, fw1, fb1, fw2, fb2, fw3, fb3)

    # LeNet shape budget requires 32x32 inputs (32 -> 28 -> 14 -> 10 -> 5 -> 400)
    x = jax.random.normal(ks[0], (2, 3, 32, 32), dtype=jnp.float32)

    packed = pack_params(params, image_hw=(32, 32))    # one-time weight repack
    fwd = jax.jit(functools.partial(convnet_forward, num_classes=output_size))
    out = fwd(x, packed)
    jax.block_until_ready(out)
    assert out.shape == (2, output_size), out.shape

    ref = reference_forward(x, params)
    err = float(jnp.max(jnp.abs(out - ref)))
    assert err < 1e-3, f"mismatch vs reference: max abs err {err}"

    print("KERNEL_OK")
</pallas_src>

<mosaic_0001>
module attributes {stable_mosaic.version = 11 : i64} {
  func.func @_convnet_kernel(%arg0: i32, %arg1: memref<1x32x96xf32, #tpu.memory_space<vmem>>, %arg2: memref<5x96x84xf32, #tpu.memory_space<vmem>>, %arg3: memref<5x96x84xf32, #tpu.memory_space<vmem>>, %arg4: memref<1x84xf32, #tpu.memory_space<vmem>>, %arg5: memref<14x28xf32, #tpu.memory_space<vmem>>, %arg6: memref<14x28xf32, #tpu.memory_space<vmem>>, %arg7: memref<5x84x80xf32, #tpu.memory_space<vmem>>, %arg8: memref<5x84x80xf32, #tpu.memory_space<vmem>>, %arg9: memref<1x80xf32, #tpu.memory_space<vmem>>, %arg10: memref<5x10xf32, #tpu.memory_space<vmem>>, %arg11: memref<5x10xf32, #tpu.memory_space<vmem>>, %arg12: memref<5x80x128xf32, #tpu.memory_space<vmem>>, %arg13: memref<1x128xf32, #tpu.memory_space<vmem>>, %arg14: memref<128x128xf32, #tpu.memory_space<vmem>>, %arg15: memref<1x128xf32, #tpu.memory_space<vmem>>, %arg16: memref<128x128xf32, #tpu.memory_space<vmem>>, %arg17: memref<1x128xf32, #tpu.memory_space<vmem>>, %arg18: memref<1x1x128xf32, #tpu.memory_space<vmem>>) attributes {dimension_semantics = [#tpu.dimension_semantics<parallel>], iteration_bounds = array<i64: 2>, scalar_prefetch = 0 : i64, scratch_operands = 0 : i64, tpu.core_type = #tpu.core_type<tc>, window_params = [{transform_indices = @transform_0, window_bounds = array<i64: 1, 32, 96>}, {pipeline_mode = #tpu.pipeline_mode<synchronous>, transform_indices = @transform_1, window_bounds = array<i64: 5, 96, 84>}, {pipeline_mode = #tpu.pipeline_mode<synchronous>, transform_indices = @transform_2, window_bounds = array<i64: 5, 96, 84>}, {pipeline_mode = #tpu.pipeline_mode<synchronous>, transform_indices = @transform_3, window_bounds = array<i64: 1, 84>}, {pipeline_mode = #tpu.pipeline_mode<synchronous>, transform_indices = @transform_4, window_bounds = array<i64: 14, 28>}, {pipeline_mode = #tpu.pipeline_mode<synchronous>, transform_indices = @transform_5, window_bounds = array<i64: 14, 28>}, {pipeline_mode = #tpu.pipeline_mode<synchronous>, transform_indices = @transform_6, window_bounds = array<i64: 5, 84, 80>}, {pipeline_mode = #tpu.pipeline_mode<synchronous>, transform_indices = @transform_7, window_bounds = array<i64: 5, 84, 80>}, {pipeline_mode = #tpu.pipeline_mode<synchronous>, transform_indices = @transform_8, window_bounds = array<i64: 1, 80>}, {pipeline_mode = #tpu.pipeline_mode<synchronous>, transform_indices = @transform_9, window_bounds = array<i64: 5, 10>}, {pipeline_mode = #tpu.pipeline_mode<synchronous>, transform_indices = @transform_10, window_bounds = array<i64: 5, 10>}, {pipeline_mode = #tpu.pipeline_mode<synchronous>, transform_indices = @transform_11, window_bounds = array<i64: 5, 80, 128>}, {pipeline_mode = #tpu.pipeline_mode<synchronous>, transform_indices = @transform_12, window_bounds = array<i64: 1, 128>}, {pipeline_mode = #tpu.pipeline_mode<synchronous>, transform_indices = @transform_13, window_bounds = array<i64: 128, 128>}, {pipeline_mode = #tpu.pipeline_mode<synchronous>, transform_indices = @transform_14, window_bounds = array<i64: 1, 128>}, {pipeline_mode = #tpu.pipeline_mode<synchronous>, transform_indices = @transform_15, window_bounds = array<i64: 128, 128>}, {pipeline_mode = #tpu.pipeline_mode<synchronous>, transform_indices = @transform_16, window_bounds = array<i64: 1, 128>}, {transform_indices = @transform_17, window_bounds = array<i64: 1, 1, 128>}]} {
    %c0 = arith.constant 0 : index
    %c0_0 = arith.constant 0 : index
    %c0_1 = arith.constant 0 : index
    %0 = vector.load %arg1[%c0, %c0_0, %c0_1] : memref<1x32x96xf32, #tpu.memory_space<vmem>>, vector<1x32x96xf32>
    %1 = vector.shape_cast %0 : vector<1x32x96xf32> to vector<32x96xf32>
    %2 = vector.extract_strided_slice %1 {offsets = [0, 0], sizes = [28, 96], strides = [1, 1]} : vector<32x96xf32> to vector<28x96xf32>
    %c0_2 = arith.constant 0 : index
    %c0_3 = arith.constant 0 : index
    %c0_4 = arith.constant 0 : index
    %3 = vector.load %arg2[%c0_2, %c0_3, %c0_4] : memref<5x96x84xf32, #tpu.memory_space<vmem>>, vector<1x96x84xf32>
    %4 = vector.shape_cast %3 : vector<1x96x84xf32> to vector<96x84xf32>
    %cst = arith.constant dense<0.000000e+00> : vector<28x84xf32>
    %5 = tpu.matmul %2, %4, %cst {dimension_numbers = #tpu.dot_dimension_numbers<[1], [0], [0], [1], [0, 0, 1, 1], [], []>} : vector<28x96xf32>, vector<96x84xf32>, vector<28x84xf32> -> vector<28x84xf32>
    %c0_5 = arith.constant 0 : index
    %c0_6 = arith.constant 0 : index
    %c0_7 = arith.constant 0 : index
    %6 = vector.load %arg3[%c0_5, %c0_6, %c0_7] : memref<5x96x84xf32, #tpu.memory_space<vmem>>, vector<1x96x84xf32>
    %7 = vector.shape_cast %6 : vector<1x96x84xf32> to vector<96x84xf32>
    %cst_8 = arith.constant dense<0.000000e+00> : vector<28x84xf32>
    %8 = tpu.matmul %2, %7, %cst_8 {dimension_numbers = #tpu.dot_dimension_numbers<[1], [0], [0], [1], [0, 0, 1, 1], [], []>} : vector<28x96xf32>, vector<96x84xf32>, vector<28x84xf32> -> vector<28x84xf32>
    %9 = vector.extract_strided_slice %1 {offsets = [1, 0], sizes = [28, 96], strides = [1, 1]} : vector<32x96xf32> to vector<28x96xf32>
    %c1 = arith.constant 1 : index
    %c0_9 = arith.constant 0 : index
    %c0_10 = arith.constant 0 : index
    %10 = vector.load %arg2[%c1, %c0_9, %c0_10] : memref<5x96x84xf32, #tpu.memory_space<vmem>>, vector<1x96x84xf32>
    %11 = vector.shape_cast %10 : vector<1x96x84xf32> to vector<96x84xf32>
    %cst_11 = arith.constant dense<0.000000e+00> : vector<28x84xf32>
    %12 = tpu.matmul %9, %11, %cst_11 {dimension_numbers = #tpu.dot_dimension_numbers<[1], [0], [0], [1], [0, 0, 1, 1], [], []>} : vector<28x96xf32>, vector<96x84xf32>, vector<28x84xf32> -> vector<28x84xf32>
    %c1_12 = arith.constant 1 : index
    %c0_13 = arith.constant 0 : index
    %c0_14 = arith.constant 0 : index
    %13 = vector.load %arg3[%c1_12, %c0_13, %c0_14] : memref<5x96x84xf32, #tpu.memory_space<vmem>>, vector<1x96x84xf32>
    %14 = vector.shape_cast %13 : vector<1x96x84xf32> to vector<96x84xf32>
    %cst_15 = arith.constant dense<0.000000e+00> : vector<28x84xf32>
    %15 = tpu.matmul %9, %14, %cst_15 {dimension_numbers = #tpu.dot_dimension_numbers<[1], [0], [0], [1], [0, 0, 1, 1], [], []>} : vector<28x96xf32>, vector<96x84xf32>, vector<28x84xf32> -> vector<28x84xf32>
    %16 = arith.addf %5, %12 : vector<28x84xf32>
    %17 = arith.addf %8, %15 : vector<28x84xf32>
    %18 = vector.extract_strided_slice %1 {offsets = [2, 0], sizes = [28, 96], strides = [1, 1]} : vector<32x96xf32> to vector<28x96xf32>
    %c2 = arith.constant 2 : index
    %c0_16 = arith.constant 0 : index
    %c0_17 = arith.constant 0 : index
    %19 = vector.load %arg2[%c2, %c0_16, %c0_17] : memref<5x96x84xf32, #tpu.memory_space<vmem>>, vector<1x96x84xf32>
    %20 = vector.shape_cast %19 : vector<1x96x84xf32> to vector<96x84xf32>
    %cst_18 = arith.constant dense<0.000000e+00> : vector<28x84xf32>
    %21 = tpu.matmul %18, %20, %cst_18 {dimension_numbers = #tpu.dot_dimension_numbers<[1], [0], [0], [1], [0, 0, 1, 1], [], []>} : vector<28x96xf32>, vector<96x84xf32>, vector<28x84xf32> -> vector<28x84xf32>
    %c2_19 = arith.constant 2 : index
    %c0_20 = arith.constant 0 : index
    %c0_21 = arith.constant 0 : index
    %22 = vector.load %arg3[%c2_19, %c0_20, %c0_21] : memref<5x96x84xf32, #tpu.memory_space<vmem>>, vector<1x96x84xf32>
    %23 = vector.shape_cast %22 : vector<1x96x84xf32> to vector<96x84xf32>
    %cst_22 = arith.constant dense<0.000000e+00> : vector<28x84xf32>
    %24 = tpu.matmul %18, %23, %cst_22 {dimension_numbers = #tpu.dot_dimension_numbers<[1], [0], [0], [1], [0, 0, 1, 1], [], []>} : vector<28x96xf32>, vector<96x84xf32>, vector<28x84xf32> -> vector<28x84xf32>
    %25 = arith.addf %16, %21 : vector<28x84xf32>
    %26 = arith.addf %17, %24 : vector<28x84xf32>
    %27 = vector.extract_strided_slice %1 {offsets = [3, 0], sizes = [28, 96], strides = [1, 1]} : vector<32x96xf32> to vector<28x96xf32>
    %c3 = arith.constant 3 : index
    %c0_23 = arith.constant 0 : index
    %c0_24 = arith.constant 0 : index
    %28 = vector.load %arg2[%c3, %c0_23, %c0_24] : memref<5x96x84xf32, #tpu.memory_space<vmem>>, vector<1x96x84xf32>
    %29 = vector.shape_cast %28 : vector<1x96x84xf32> to vector<96x84xf32>
    %cst_25 = arith.constant dense<0.000000e+00> : vector<28x84xf32>
    %30 = tpu.matmul %27, %29, %cst_25 {dimension_numbers = #tpu.dot_dimension_numbers<[1], [0], [0], [1], [0, 0, 1, 1], [], []>} : vector<28x96xf32>, vector<96x84xf32>, vector<28x84xf32> -> vector<28x84xf32>
    %c3_26 = arith.constant 3 : index
    %c0_27 = arith.constant 0 : index
    %c0_28 = arith.constant 0 : index
    %31 = vector.load %arg3[%c3_26, %c0_27, %c0_28] : memref<5x96x84xf32, #tpu.memory_space<vmem>>, vector<1x96x84xf32>
    %32 = vector.shape_cast %31 : vector<1x96x84xf32> to vector<96x84xf32>
    %cst_29 = arith.constant dense<0.000000e+00> : vector<28x84xf32>
    %33 = tpu.matmul %27, %32, %cst_29 {dimension_numbers = #tpu.dot_dimension_numbers<[1], [0], [0], [1], [0, 0, 1, 1], [], []>} : vector<28x96xf32>, vector<96x84xf32>, vector<28x84xf32> -> vector<28x84xf32>
    %34 = arith.addf %25, %30 : vector<28x84xf32>
    %35 = arith.addf %26, %33 : vector<28x84xf32>
    %36 = vector.extract_strided_slice %1 {offsets = [4, 0], sizes = [28, 96], strides = [1, 1]} : vector<32x96xf32> to vector<28x96xf32>
    %c4 = arith.constant 4 : index
    %c0_30 = arith.constant 0 : index
    %c0_31 = arith.constant 0 : index
    %37 = vector.load %arg2[%c4, %c0_30, %c0_31] : memref<5x96x84xf32, #tpu.memory_space<vmem>>, vector<1x96x84xf32>
    %38 = vector.shape_cast %37 : vector<1x96x84xf32> to vector<96x84xf32>
    %cst_32 = arith.constant dense<0.000000e+00> : vector<28x84xf32>
    %39 = tpu.matmul %36, %38, %cst_32 {dimension_numbers = #tpu.dot_dimension_numbers<[1], [0], [0], [1], [0, 0, 1, 1], [], []>} : vector<28x96xf32>, vector<96x84xf32>, vector<28x84xf32> -> vector<28x84xf32>
    %c4_33 = arith.constant 4 : index
    %c0_34 = arith.constant 0 : index
    %c0_35 = arith.constant 0 : index
    %40 = vector.load %arg3[%c4_33, %c0_34, %c0_35] : memref<5x96x84xf32, #tpu.memory_space<vmem>>, vector<1x96x84xf32>
    %41 = vector.shape_cast %40 : vector<1x96x84xf32> to vector<96x84xf32>
    %cst_36 = arith.constant dense<0.000000e+00> : vector<28x84xf32>
    %42 = tpu.matmul %36, %41, %cst_36 {dimension_numbers = #tpu.dot_dimension_numbers<[1], [0], [0], [1], [0, 0, 1, 1], [], []>} : vector<28x96xf32>, vector<96x84xf32>, vector<28x84xf32> -> vector<28x84xf32>
    %43 = arith.addf %34, %39 : vector<28x84xf32>
    %44 = arith.addf %35, %42 : vector<28x84xf32>
    %c0_37 = arith.constant 0 : index
    %c0_38 = arith.constant 0 : index
    %45 = vector.load %arg4[%c0_37, %c0_38] : memref<1x84xf32, #tpu.memory_space<vmem>>, vector<1x84xf32>
    %46 = vector.broadcast %45 : vector<1x84xf32> to vector<28x84xf32>
    %47 = arith.addf %43, %46 : vector<28x84xf32>
    %cst_39 = arith.constant 0.000000e+00 : f32
    %48 = vector.broadcast %cst_39 : f32 to vector<28x84xf32>
    %49 = arith.maximumf %47, %48 : vector<28x84xf32>
    %50 = vector.broadcast %45 : vector<1x84xf32> to vector<28x84xf32>
    %51 = arith.addf %44, %50 : vector<28x84xf32>
    %cst_40 = arith.constant 0.000000e+00 : f32
    %52 = vector.broadcast %cst_40 : f32 to vector<28x84xf32>
    %53 = arith.maximumf %51, %52 : vector<28x84xf32>
    %54 = arith.maximumf %49, %53 : vector<28x84xf32>
    %c0_41 = arith.constant 0 : index
    %c0_42 = arith.constant 0 : index
    %55 = vector.load %arg5[%c0_41, %c0_42] : memref<14x28xf32, #tpu.memory_space<vmem>>, vector<14x28xf32>
    %cst_43 = arith.constant dense<0.000000e+00> : vector<14x84xf32>
    %56 = tpu.matmul %55, %54, %cst_43 {dimension_numbers = #tpu.dot_dimension_numbers<[1], [0], [0], [1], [0, 0, 1, 1], [], []>} : vector<14x28xf32>, vector<28x84xf32>, vector<14x84xf32> -> vector<14x84xf32>
    %c0_44 = arith.constant 0 : index
    %c0_45 = arith.constant 0 : index
    %57 = vector.load %arg6[%c0_44, %c0_45] : memref<14x28xf32, #tpu.memory_space<vmem>>, vector<14x28xf32>
    %cst_46 = arith.constant dense<0.000000e+00> : vector<14x84xf32>
    %58 = tpu.matmul %57, %54, %cst_46 {dimension_numbers = #tpu.dot_dimension_numbers<[1], [0], [0], [1], [0, 0, 1, 1], [], []>} : vector<14x28xf32>, vector<28x84xf32>, vector<14x84xf32> -> vector<14x84xf32>
    %59 = arith.maximumf %56, %58 : vector<14x84xf32>
    %60 = vector.extract_strided_slice %59 {offsets = [0, 0], sizes = [10, 84], strides = [1, 1]} : vector<14x84xf32> to vector<10x84xf32>
    %c0_47 = arith.constant 0 : index
    %c0_48 = arith.constant 0 : index
    %c0_49 = arith.constant 0 : index
    %61 = vector.load %arg7[%c0_47, %c0_48, %c0_49] : memref<5x84x80xf32, #tpu.memory_space<vmem>>, vector<1x84x80xf32>
    %62 = vector.shape_cast %61 : vector<1x84x80xf32> to vector<84x80xf32>
    %cst_50 = arith.constant dense<0.000000e+00> : vector<10x80xf32>
    %63 = tpu.matmul %60, %62, %cst_50 {dimension_numbers = #tpu.dot_dimension_numbers<[1], [0], [0], [1], [0, 0, 1, 1], [], []>} : vector<10x84xf32>, vector<84x80xf32>, vector<10x80xf32> -> vector<10x80xf32>
    %c0_51 = arith.constant 0 : index
    %c0_52 = arith.constant 0 : index
    %c0_53 = arith.constant 0 : index
    %64 = vector.load %arg8[%c0_51, %c0_52, %c0_53] : memref<5x84x80xf32, #tpu.memory_space<vmem>>, vector<1x84x80xf32>
    %65 = vector.shape_cast %64 : vector<1x84x80xf32> to vector<84x80xf32>
    %cst_54 = arith.constant dense<0.000000e+00> : vector<10x80xf32>
    %66 = tpu.matmul %60, %65, %cst_54 {dimension_numbers = #tpu.dot_dimension_numbers<[1], [0], [0], [1], [0, 0, 1, 1], [], []>} : vector<10x84xf32>, vector<84x80xf32>, vector<10x80xf32> -> vector<10x80xf32>
    %67 = vector.extract_strided_slice %59 {offsets = [1, 0], sizes = [10, 84], strides = [1, 1]} : vector<14x84xf32> to vector<10x84xf32>
    %c1_55 = arith.constant 1 : index
    %c0_56 = arith.constant 0 : index
    %c0_57 = arith.constant 0 : index
    %68 = vector.load %arg7[%c1_55, %c0_56, %c0_57] : memref<5x84x80xf32, #tpu.memory_space<vmem>>, vector<1x84x80xf32>
    %69 = vector.shape_cast %68 : vector<1x84x80xf32> to vector<84x80xf32>
    %cst_58 = arith.constant dense<0.000000e+00> : vector<10x80xf32>
    %70 = tpu.matmul %67, %69, %cst_58 {dimension_numbers = #tpu.dot_dimension_numbers<[1], [0], [0], [1], [0, 0, 1, 1], [], []>} : vector<10x84xf32>, vector<84x80xf32>, vector<10x80xf32> -> vector<10x80xf32>
    %c1_59 = arith.constant 1 : index
    %c0_60 = arith.constant 0 : index
    %c0_61 = arith.constant 0 : index
    %71 = vector.load %arg8[%c1_59, %c0_60, %c0_61] : memref<5x84x80xf32, #tpu.memory_space<vmem>>, vector<1x84x80xf32>
    %72 = vector.shape_cast %71 : vector<1x84x80xf32> to vector<84x80xf32>
    %cst_62 = arith.constant dense<0.000000e+00> : vector<10x80xf32>
    %73 = tpu.matmul %67, %72, %cst_62 {dimension_numbers = #tpu.dot_dimension_numbers<[1], [0], [0], [1], [0, 0, 1, 1], [], []>} : vector<10x84xf32>, vector<84x80xf32>, vector<10x80xf32> -> vector<10x80xf32>
    %74 = arith.addf %63, %70 : vector<10x80xf32>
    %75 = arith.addf %66, %73 : vector<10x80xf32>
    %76 = vector.extract_strided_slice %59 {offsets = [2, 0], sizes = [10, 84], strides = [1, 1]} : vector<14x84xf32> to vector<10x84xf32>
    %c2_63 = arith.constant 2 : index
    %c0_64 = arith.constant 0 : index
    %c0_65 = arith.constant 0 : index
    %77 = vector.load %arg7[%c2_63, %c0_64, %c0_65] : memref<5x84x80xf32, #tpu.memory_space<vmem>>, vector<1x84x80xf32>
    %78 = vector.shape_cast %77 : vector<1x84x80xf32> to vector<84x80xf32>
    %cst_66 = arith.constant dense<0.000000e+00> : vector<10x80xf32>
    %79 = tpu.matmul %76, %78, %cst_66 {dimension_numbers = #tpu.dot_dimension_numbers<[1], [0], [0], [1], [0, 0, 1, 1], [], []>} : vector<10x84xf32>, vector<84x80xf32>, vector<10x80xf32> -> vector<10x80xf32>
    %c2_67 = arith.constant 2 : index
    %c0_68 = arith.constant 0 : index
    %c0_69 = arith.constant 0 : index
    %80 = vector.load %arg8[%c2_67, %c0_68, %c0_69] : memref<5x84x80xf32, #tpu.memory_space<vmem>>, vector<1x84x80xf32>
    %81 = vector.shape_cast %80 : vector<1x84x80xf32> to vector<84x80xf32>
    %cst_70 = arith.constant dense<0.000000e+00> : vector<10x80xf32>
    %82 = tpu.matmul %76, %81, %cst_70 {dimension_numbers = #tpu.dot_dimension_numbers<[1], [0], [0], [1], [0, 0, 1, 1], [], []>} : vector<10x84xf32>, vector<84x80xf32>, vector<10x80xf32> -> vector<10x80xf32>
    %83 = arith.addf %74, %79 : vector<10x80xf32>
    %84 = arith.addf %75, %82 : vector<10x80xf32>
    %85 = vector.extract_strided_slice %59 {offsets = [3, 0], sizes = [10, 84], strides = [1, 1]} : vector<14x84xf32> to vector<10x84xf32>
    %c3_71 = arith.constant 3 : index
    %c0_72 = arith.constant 0 : index
    %c0_73 = arith.constant 0 : index
    %86 = vector.load %arg7[%c3_71, %c0_72, %c0_73] : memref<5x84x80xf32, #tpu.memory_space<vmem>>, vector<1x84x80xf32>
    %87 = vector.shape_cast %86 : vector<1x84x80xf32> to vector<84x80xf32>
    %cst_74 = arith.constant dense<0.000000e+00> : vector<10x80xf32>
    %88 = tpu.matmul %85, %87, %cst_74 {dimension_numbers = #tpu.dot_dimension_numbers<[1], [0], [0], [1], [0, 0, 1, 1], [], []>} : vector<10x84xf32>, vector<84x80xf32>, vector<10x80xf32> -> vector<10x80xf32>
    %c3_75 = arith.constant 3 : index
    %c0_76 = arith.constant 0 : index
    %c0_77 = arith.constant 0 : index
    %89 = vector.load %arg8[%c3_75, %c0_76, %c0_77] : memref<5x84x80xf32, #tpu.memory_space<vmem>>, vector<1x84x80xf32>
    %90 = vector.shape_cast %89 : vector<1x84x80xf32> to vector<84x80xf32>
    %cst_78 = arith.constant dense<0.000000e+00> : vector<10x80xf32>
    %91 = tpu.matmul %85, %90, %cst_78 {dimension_numbers = #tpu.dot_dimension_numbers<[1], [0], [0], [1], [0, 0, 1, 1], [], []>} : vector<10x84xf32>, vector<84x80xf32>, vector<10x80xf32> -> vector<10x80xf32>
    %92 = arith.addf %83, %88 : vector<10x80xf32>
    %93 = arith.addf %84, %91 : vector<10x80xf32>
    %94 = vector.extract_strided_slice %59 {offsets = [4, 0], sizes = [10, 84], strides = [1, 1]} : vector<14x84xf32> to vector<10x84xf32>
    %c4_79 = arith.constant 4 : index
    %c0_80 = arith.constant 0 : index
    %c0_81 = arith.constant 0 : index
    %95 = vector.load %arg7[%c4_79, %c0_80, %c0_81] : memref<5x84x80xf32, #tpu.memory_space<vmem>>, vector<1x84x80xf32>
    %96 = vector.shape_cast %95 : vector<1x84x80xf32> to vector<84x80xf32>
    %cst_82 = arith.constant dense<0.000000e+00> : vector<10x80xf32>
    %97 = tpu.matmul %94, %96, %cst_82 {dimension_numbers = #tpu.dot_dimension_numbers<[1], [0], [0], [1], [0, 0, 1, 1], [], []>} : vector<10x84xf32>, vector<84x80xf32>, vector<10x80xf32> -> vector<10x80xf32>
    %c4_83 = arith.constant 4 : index
    %c0_84 = arith.constant 0 : index
    %c0_85 = arith.constant 0 : index
    %98 = vector.load %arg8[%c4_83, %c0_84, %c0_85] : memref<5x84x80xf32, #tpu.memory_space<vmem>>, vector<1x84x80xf32>
    %99 = vector.shape_cast %98 : vector<1x84x80xf32> to vector<84x80xf32>
    %cst_86 = arith.constant dense<0.000000e+00> : vector<10x80xf32>
    %100 = tpu.matmul %94, %99, %cst_86 {dimension_numbers = #tpu.dot_dimension_numbers<[1], [0], [0], [1], [0, 0, 1, 1], [], []>} : vector<10x84xf32>, vector<84x80xf32>, vector<10x80xf32> -> vector<10x80xf32>
    %101 = arith.addf %92, %97 : vector<10x80xf32>
    %102 = arith.addf %93, %100 : vector<10x80xf32>
    %c0_87 = arith.constant 0 : index
    %c0_88 = arith.constant 0 : index
    %103 = vector.load %arg9[%c0_87, %c0_88] : memref<1x80xf32, #tpu.memory_space<vmem>>, vector<1x80xf32>
    %104 = vector.broadcast %103 : vector<1x80xf32> to vector<10x80xf32>
    %105 = arith.addf %101, %104 : vector<10x80xf32>
    %cst_89 = arith.constant 0.000000e+00 : f32
    %106 = vector.broadcast %cst_89 : f32 to vector<10x80xf32>
    %107 = arith.maximumf %105, %106 : vector<10x80xf32>
    %108 = vector.broadcast %103 : vector<1x80xf32> to vector<10x80xf32>
    %109 = arith.addf %102, %108 : vector<10x80xf32>
    %cst_90 = arith.constant 0.000000e+00 : f32
    %110 = vector.broadcast %cst_90 : f32 to vector<10x80xf32>
    %111 = arith.maximumf %109, %110 : vector<10x80xf32>
    %112 = arith.maximumf %107, %111 : vector<10x80xf32>
    %c0_91 = arith.constant 0 : index
    %c0_92 = arith.constant 0 : index
    %113 = vector.load %arg10[%c0_91, %c0_92] : memref<5x10xf32, #tpu.memory_space<vmem>>, vector<5x10xf32>
    %cst_93 = arith.constant dense<0.000000e+00> : vector<5x80xf32>
    %114 = tpu.matmul %113, %112, %cst_93 {dimension_numbers = #tpu.dot_dimension_numbers<[1], [0], [0], [1], [0, 0, 1, 1], [], []>} : vector<5x10xf32>, vector<10x80xf32>, vector<5x80xf32> -> vector<5x80xf32>
    %c0_94 = arith.constant 0 : index
    %c0_95 = arith.constant 0 : index
    %115 = vector.load %arg11[%c0_94, %c0_95] : memref<5x10xf32, #tpu.memory_space<vmem>>, vector<5x10xf32>
    %cst_96 = arith.constant dense<0.000000e+00> : vector<5x80xf32>
    %116 = tpu.matmul %115, %112, %cst_96 {dimension_numbers = #tpu.dot_dimension_numbers<[1], [0], [0], [1], [0, 0, 1, 1], [], []>} : vector<5x10xf32>, vector<10x80xf32>, vector<5x80xf32> -> vector<5x80xf32>
    %117 = arith.maximumf %114, %116 : vector<5x80xf32>
    %c0_97 = arith.constant 0 : index
    %c0_98 = arith.constant 0 : index
    %118 = vector.load %arg13[%c0_97, %c0_98] : memref<1x128xf32, #tpu.memory_space<vmem>>, vector<1x128xf32>
    %119 = vector.extract_strided_slice %117 {offsets = [0, 0], sizes = [1, 80], strides = [1, 1]} : vector<5x80xf32> to vector<1x80xf32>
    %c0_99 = arith.constant 0 : index
    %c0_100 = arith.constant 0 : index
    %c0_101 = arith.constant 0 : index
    %120 = vector.load %arg12[%c0_99, %c0_100, %c0_101] : memref<5x80x128xf32, #tpu.memory_space<vmem>>, vector<1x80x128xf32>
    %121 = vector.shape_cast %120 : vector<1x80x128xf32> to vector<80x128xf32>
    %cst_102 = arith.constant dense<0.000000e+00> : vector<1x128xf32>
    %122 = tpu.matmul %119, %121, %cst_102 {dimension_numbers = #tpu.dot_dimension_numbers<[1], [0], [0], [1], [0, 0, 1, 1], [], []>} : vector<1x80xf32>, vector<80x128xf32>, vector<1x128xf32> -> vector<1x128xf32>
    %123 = arith.addf %118, %122 : vector<1x128xf32>
    %124 = vector.extract_strided_slice %117 {offsets = [1, 0], sizes = [1, 80], strides = [1, 1]} : vector<5x80xf32> to vector<1x80xf32>
    %c1_103 = arith.constant 1 : index
    %c0_104 = arith.constant 0 : index
    %c0_105 = arith.constant 0 : index
    %125 = vector.load %arg12[%c1_103, %c0_104, %c0_105] : memref<5x80x128xf32, #tpu.memory_space<vmem>>, vector<1x80x128xf32>
    %126 = vector.shape_cast %125 : vector<1x80x128xf32> to vector<80x128xf32>
    %cst_106 = arith.constant dense<0.000000e+00> : vector<1x128xf32>
    %127 = tpu.matmul %124, %126, %cst_106 {dimension_numbers = #tpu.dot_dimension_numbers<[1], [0], [0], [1], [0, 0, 1, 1], [], []>} : vector<1x80xf32>, vector<80x128xf32>, vector<1x128xf32> -> vector<1x128xf32>
    %128 = arith.addf %123, %127 : vector<1x128xf32>
    %129 = vector.extract_strided_slice %117 {offsets = [2, 0], sizes = [1, 80], strides = [1, 1]} : vector<5x80xf32> to vector<1x80xf32>
    %c2_107 = arith.constant 2 : index
    %c0_108 = arith.constant 0 : index
    %c0_109 = arith.constant 0 : index
    %130 = vector.load %arg12[%c2_107, %c0_108, %c0_109] : memref<5x80x128xf32, #tpu.memory_space<vmem>>, vector<1x80x128xf32>
    %131 = vector.shape_cast %130 : vector<1x80x128xf32> to vector<80x128xf32>
    %cst_110 = arith.constant dense<0.000000e+00> : vector<1x128xf32>
    %132 = tpu.matmul %129, %131, %cst_110 {dimension_numbers = #tpu.dot_dimension_numbers<[1], [0], [0], [1], [0, 0, 1, 1], [], []>} : vector<1x80xf32>, vector<80x128xf32>, vector<1x128xf32> -> vector<1x128xf32>
    %133 = arith.addf %128, %132 : vector<1x128xf32>
    %134 = vector.extract_strided_slice %117 {offsets = [3, 0], sizes = [1, 80], strides = [1, 1]} : vector<5x80xf32> to vector<1x80xf32>
    %c3_111 = arith.constant 3 : index
    %c0_112 = arith.constant 0 : index
    %c0_113 = arith.constant 0 : index
    %135 = vector.load %arg12[%c3_111, %c0_112, %c0_113] : memref<5x80x128xf32, #tpu.memory_space<vmem>>, vector<1x80x128xf32>
    %136 = vector.shape_cast %135 : vector<1x80x128xf32> to vector<80x128xf32>
    %cst_114 = arith.constant dense<0.000000e+00> : vector<1x128xf32>
    %137 = tpu.matmul %134, %136, %cst_114 {dimension_numbers = #tpu.dot_dimension_numbers<[1], [0], [0], [1], [0, 0, 1, 1], [], []>} : vector<1x80xf32>, vector<80x128xf32>, vector<1x128xf32> -> vector<1x128xf32>
    %138 = arith.addf %133, %137 : vector<1x128xf32>
    %139 = vector.extract_strided_slice %117 {offsets = [4, 0], sizes = [1, 80], strides = [1, 1]} : vector<5x80xf32> to vector<1x80xf32>
    %c4_115 = arith.constant 4 : index
    %c0_116 = arith.constant 0 : index
    %c0_117 = arith.constant 0 : index
    %140 = vector.load %arg12[%c4_115, %c0_116, %c0_117] : memref<5x80x128xf32, #tpu.memory_space<vmem>>, vector<1x80x128xf32>
    %141 = vector.shape_cast %140 : vector<1x80x128xf32> to vector<80x128xf32>
    %cst_118 = arith.constant dense<0.000000e+00> : vector<1x128xf32>
    %142 = tpu.matmul %139, %141, %cst_118 {dimension_numbers = #tpu.dot_dimension_numbers<[1], [0], [0], [1], [0, 0, 1, 1], [], []>} : vector<1x80xf32>, vector<80x128xf32>, vector<1x128xf32> -> vector<1x128xf32>
    %143 = arith.addf %138, %142 : vector<1x128xf32>
    %cst_119 = arith.constant 0.000000e+00 : f32
    %144 = vector.broadcast %cst_119 : f32 to vector<1x128xf32>
    %145 = arith.maximumf %143, %144 : vector<1x128xf32>
    %c0_120 = arith.constant 0 : index
    %c0_121 = arith.constant 0 : index
    %146 = vector.load %arg14[%c0_120, %c0_121] : memref<128x128xf32, #tpu.memory_space<vmem>>, vector<128x128xf32>
    %cst_122 = arith.constant dense<0.000000e+00> : vector<1x128xf32>
    %147 = tpu.matmul %145, %146, %cst_122 {dimension_numbers = #tpu.dot_dimension_numbers<[1], [0], [0], [1], [0, 0, 1, 1], [], []>} : vector<1x128xf32>, vector<128x128xf32>, vector<1x128xf32> -> vector<1x128xf32>
    %c0_123 = arith.constant 0 : index
    %c0_124 = arith.constant 0 : index
    %148 = vector.load %arg15[%c0_123, %c0_124] : memref<1x128xf32, #tpu.memory_space<vmem>>, vector<1x128xf32>
    %149 = arith.addf %147, %148 : vector<1x128xf32>
    %cst_125 = arith.constant 0.000000e+00 : f32
    %150 = vector.broadcast %cst_125 : f32 to vector<1x128xf32>
    %151 = arith.maximumf %149, %150 : vector<1x128xf32>
    %c0_126 = arith.constant 0 : index
    %c0_127 = arith.constant 0 : index
    %152 = vector.load %arg16[%c0_126, %c0_127] : memref<128x128xf32, #tpu.memory_space<vmem>>, vector<128x128xf32>
    %cst_128 = arith.constant dense<0.000000e+00> : vector<1x128xf32>
    %153 = tpu.matmul %151, %152, %cst_128 {dimension_numbers = #tpu.dot_dimension_numbers<[1], [0], [0], [1], [0, 0, 1, 1], [], []>} : vector<1x128xf32>, vector<128x128xf32>, vector<1x128xf32> -> vector<1x128xf32>
    %c0_129 = arith.constant 0 : index
    %c0_130 = arith.constant 0 : index
    %154 = vector.load %arg17[%c0_129, %c0_130] : memref<1x128xf32, #tpu.memory_space<vmem>>, vector<1x128xf32>
    %155 = arith.addf %153, %154 : vector<1x128xf32>
    %c0_131 = arith.constant 0 : index
    %c0_132 = arith.constant 0 : index
    %c0_133 = arith.constant 0 : index
    %156 = vector.load %arg18[%c0_131, %c0_132, %c0_133] : memref<1x1x128xf32, #tpu.memory_space<vmem>>, vector<1x1x128xf32>
    %157 = vector.shape_cast %156 : vector<1x1x128xf32> to vector<1x128xf32>
    %158 = vector.shape_cast %155 : vector<1x128xf32> to vector<1x1x128xf32>
    tpu.vector_store %arg18[%c0_131, %c0_132, %c0_133], %158 {strides = array<i32>} : memref<1x1x128xf32, #tpu.memory_space<vmem>>, vector<1x1x128xf32>,
    return
  }
  func.func @transform_0(%arg0: i32) -> (i32, i32, i32) {
    %c0_i32 = arith.constant 0 : i32
    %c0_i32_0 = arith.constant 0 : i32
    %c0_i32_1 = arith.constant 0 : i32
    return %arg0, %c0_i32, %c0_i32_0 : i32, i32, i32
  }
  func.func @transform_1(%arg0: i32) -> (i32, i32, i32) {
    %c0_i32 = arith.constant 0 : i32
    %c0_i32_0 = arith.constant 0 : i32
    %c0_i32_1 = arith.constant 0 : i32
    %c0_i32_2 = arith.constant 0 : i32
    return %c0_i32, %c0_i32_0, %c0_i32_1 : i32, i32, i32
  }
  func.func @transform_2(%arg0: i32) -> (i32, i32, i32) {
    %c0_i32 = arith.constant 0 : i32
    %c0_i32_0 = arith.constant 0 : i32
    %c0_i32_1 = arith.constant 0 : i32
    %c0_i32_2 = arith.constant 0 : i32
    return %c0_i32, %c0_i32_0, %c0_i32_1 : i32, i32, i32
  }
  func.func @transform_3(%arg0: i32) -> (i32, i32) {
    %c0_i32 = arith.constant 0 : i32
    %c0_i32_0 = arith.constant 0 : i32
    %c0_i32_1 = arith.constant 0 : i32
    return %c0_i32, %c0_i32_0 : i32, i32
  }
  func.func @transform_4(%arg0: i32) -> (i32, i32) {
    %c0_i32 = arith.constant 0 : i32
    %c0_i32_0 = arith.constant 0 : i32
    %c0_i32_1 = arith.constant 0 : i32
    return %c0_i32, %c0_i32_0 : i32, i32
  }
  func.func @transform_5(%arg0: i32) -> (i32, i32) {
    %c0_i32 = arith.constant 0 : i32
    %c0_i32_0 = arith.constant 0 : i32
    %c0_i32_1 = arith.constant 0 : i32
    return %c0_i32, %c0_i32_0 : i32, i32
  }
  func.func @transform_6(%arg0: i32) -> (i32, i32, i32) {
    %c0_i32 = arith.constant 0 : i32
    %c0_i32_0 = arith.constant 0 : i32
    %c0_i32_1 = arith.constant 0 : i32
    %c0_i32_2 = arith.constant 0 : i32
    return %c0_i32, %c0_i32_0, %c0_i32_1 : i32, i32, i32
  }
  func.func @transform_7(%arg0: i32) -> (i32, i32, i32) {
    %c0_i32 = arith.constant 0 : i32
    %c0_i32_0 = arith.constant 0 : i32
    %c0_i32_1 = arith.constant 0 : i32
    %c0_i32_2 = arith.constant 0 : i32
    return %c0_i32, %c0_i32_0, %c0_i32_1 : i32, i32, i32
  }
  func.func @transform_8(%arg0: i32) -> (i32, i32) {
    %c0_i32 = arith.constant 0 : i32
    %c0_i32_0 = arith.constant 0 : i32
    %c0_i32_1 = arith.constant 0 : i32
    return %c0_i32, %c0_i32_0 : i32, i32
  }
  func.func @transform_9(%arg0: i32) -> (i32, i32) {
    %c0_i32 = arith.constant 0 : i32
    %c0_i32_0 = arith.constant 0 : i32
    %c0_i32_1 = arith.constant 0 : i32
    return %c0_i32, %c0_i32_0 : i32, i32
  }
  func.func @transform_10(%arg0: i32) -> (i32, i32) {
    %c0_i32 = arith.constant 0 : i32
    %c0_i32_0 = arith.constant 0 : i32
    %c0_i32_1 = arith.constant 0 : i32
    return %c0_i32, %c0_i32_0 : i32, i32
  }
  func.func @transform_11(%arg0: i32) -> (i32, i32, i32) {
    %c0_i32 = arith.constant 0 : i32
    %c0_i32_0 = arith.constant 0 : i32
    %c0_i32_1 = arith.constant 0 : i32
    %c0_i32_2 = arith.constant 0 : i32
    return %c0_i32, %c0_i32_0, %c0_i32_1 : i32, i32, i32
  }
  func.func @transform_12(%arg0: i32) -> (i32, i32) {
    %c0_i32 = arith.constant 0 : i32
    %c0_i32_0 = arith.constant 0 : i32
    %c0_i32_1 = arith.constant 0 : i32
    return %c0_i32, %c0_i32_0 : i32, i32
  }
  func.func @transform_13(%arg0: i32) -> (i32, i32) {
    %c0_i32 = arith.constant 0 : i32
    %c0_i32_0 = arith.constant 0 : i32
    %c0_i32_1 = arith.constant 0 : i32
    return %c0_i32, %c0_i32_0 : i32, i32
  }
  func.func @transform_14(%arg0: i32) -> (i32, i32) {
    %c0_i32 = arith.constant 0 : i32
    %c0_i32_0 = arith.constant 0 : i32
    %c0_i32_1 = arith.constant 0 : i32
    return %c0_i32, %c0_i32_0 : i32, i32
  }
  func.func @transform_15(%arg0: i32) -> (i32, i32) {
    %c0_i32 = arith.constant 0 : i32
    %c0_i32_0 = arith.constant 0 : i32
    %c0_i32_1 = arith.constant 0 : i32
    return %c0_i32, %c0_i32_0 : i32, i32
  }
  func.func @transform_16(%arg0: i32) -> (i32, i32) {
    %c0_i32 = arith.constant 0 : i32
    %c0_i32_0 = arith.constant 0 : i32
    %c0_i32_1 = arith.constant 0 : i32
    return %c0_i32, %c0_i32_0 : i32, i32
  }
  func.func @transform_17(%arg0: i32) -> (i32, i32, i32) {
    %c0_i32 = arith.constant 0 : i32
    %c0_i32_0 = arith.constant 0 : i32
    %c0_i32_1 = arith.constant 0 : i32
    return %arg0, %c0_i32, %c0_i32_0 : i32, i32, i32
  }
}

</mosaic_0001>

<bundles_post_ra>
// kernel: convnet_forward.1
= control target key start
LH: loop header
LB: loop body
LE: loop exit
PB: predicated region body
PF: predicated region fallthrough
CT: control target
= control target key end

     0   :  { %s3731_s0 = inlined_call_operand.vmem [shape: f32[2,32,96], index: 0, kind: input, shape index: {}]   ;;  %s3732_s1 = inlined_call_operand.vmem [shape: f32[5,96,84], index: 1, kind: input, shape index: {}]   ;;  %s3733_s2 = inlined_call_operand.vmem [shape: f32[5,96,84], index: 2, kind: input, shape index: {}]   ;;  %s3734_s3 = inlined_call_operand.vmem [shape: f32[1,84], index: 3, kind: input, shape index: {}]   ;;  %s3735_s4 = inlined_call_operand.vmem [shape: f32[14,28], index: 4, kind: input, shape index: {}]   ;;  %s3736_s5 = inlined_call_operand.vmem [shape: f32[14,28], index: 5, kind: input, shape index: {}]   ;;  %s3737_s6 = inlined_call_operand.vmem [shape: f32[5,84,80], index: 6, kind: input, shape index: {}]   ;;  %s3738_s7 = inlined_call_operand.vmem [shape: f32[5,84,80], index: 7, kind: input, shape index: {}]   ;;  %s3739_s8 = inlined_call_operand.vmem [shape: f32[1,80], index: 8, kind: input, shape index: {}]   ;;  %s3740_s9 = inlined_call_operand.vmem [shape: f32[5,10], index: 9, kind: input, shape index: {}]   ;;  %s3741_s10 = inlined_call_operand.vmem [shape: f32[5,10], index: 10, kind: input, shape index: {}]   ;;  %s3742_s11 = inlined_call_operand.vmem [shape: f32[5,80,128], index: 11, kind: input, shape index: {}]   ;;  %s3743_s12 = inlined_call_operand.vmem [shape: f32[1,128], index: 12, kind: input, shape index: {}]   ;;  %s3744_s13 = inlined_call_operand.vmem [shape: f32[128,128], index: 13, kind: input, shape index: {}]   ;;  %s3745_s14 = inlined_call_operand.vmem [shape: f32[1,128], index: 14, kind: input, shape index: {}]   ;;  %s3746_s15 = inlined_call_operand.vmem [shape: f32[128,128], index: 15, kind: input, shape index: {}]   ;;  %s3747_s16 = inlined_call_operand.vmem [shape: f32[1,128], index: 16, kind: input, shape index: {}]   ;;  %s3748_s17 = inlined_call_operand.hbm [shape: f32[2,1,128], index: 17, kind: output, shape index: {}]  }
   0x1   :  { %3758 = sst [smem:[#allocation12_spill]] %s3731_s0 }
   0x2   :  { %3759 = sst [smem:[#allocation13_spill]] %s3732_s1 }
   0x3   :  { %3760 = sst [smem:[#allocation14_spill]] %s3733_s2 }
   0x4   :  { %3761 = sst [smem:[#allocation15_spill]] %s3747_s16 }
   0x5   :  { %22 = vsyncpa [#allocation3], 0 }
   0x6   :  { %24 = vsyncpa [#allocation3 + $0x1], 0  ;;  %s2488_s24 = smov 0   ;;  %s2490_s25 = smov 0  }
   0x7   :  { %s2492_s26 = smov 0   ;;  %s2494_s27 = smov 0  }
   0x8 LB: > { %3762 = sst [smem:[#allocation5_spill]] %s2384_s24  ;;  %s2509_s28 = sadd.s32 4294967295, %s2396_s27   ;;  %s2396_s27 = sphi %s2494_s27, %s3779_s27   ;;  %s2392_s26 = sphi %s2492_s26, %s3781_s26   ;;  %s2388_s25 = sphi %s2490_s25, %s3783_s25   ;;  %s2384_s24 = sphi %s2488_s24, %s3782_s24  }
   0x9   : > { %3763 = sst [smem:[#allocation6_spill]] %s2392_s26  ;;  %s1975_s29 = sadd.s32 4294967294, %s2396_s27  }
   0xa   : > { %3764 = sst [smem:[#allocation7_spill]] %s2396_s27  ;;  %s2513_s0 = sadd.s32 1, %s2396_s27  }
   0xb   : > { %3765 = sst [smem:[#allocation8_spill]] %s2513_s0  ;;  %s399_s30 = sadd.s32 1, %s2392_s26 }
   0xc   : > { %s396_s18 = ssub.s32 %s2396_s27, %s2513_s0  ;;  %p409_p0 = scmp.ne.s32.totalorder %s2392_s26, %s2388_s25 }
   0xd   : > { %p397_p1 = scmp.eq.s32.totalorder %s396_s18, 0  ;;  %p410_p2 = scmp.eq.s32.totalorder %s2509_s28, 1 }
   0xe   : > { %p415_p3 = scmp.ne.s32.totalorder %s2388_s25, %s2384_s24  ;;  %p416_p4 = scmp.eq.s32.totalorder %s1975_s29, 1 }
   0xf   : > { %s2524_s19 = scalar_select %p397_p1, %s2392_s26, %s399_s30  }
  0x10   : > { %p2526_p5 = por %p410_p2, %p409_p0  ;;  %p2530_p6 = por %p416_p4, %p415_p3 }
  0x11   : > { %3766 = sst [smem:[#allocation9_spill]] %s2524_s19  ;;  %p1978_p7 = scmp.ge.s32.totalorder %s2396_s27, 1 }
  0x12   : > { %s3767_s1 = scalar_select %p2526_p5, 1, 0 }
  0x13   : > { %s3769_s20 = scalar_select %p2530_p6, 1, 0 }
  0x14   : > { %3768 = sst [smem:[#allocation10_spill]] %s3767_s1  ;;  %p490_p8 = scmp.lt.s32.totalorder %s2396_s27, 3 }
  0x15   : > { %3770 = sst [smem:[#allocation11_spill]] %s3769_s20 }
  0x16   : > { %p491_p9 = pnand %p1978_p7, %p490_p8 }
  0x17   : > { %s3771_s23 = sld [smem:[#allocation13_spill]] (!%p491_p9)  ;;  %p541_p10 = scmp.lt.s32.totalorder (!%p491_p9), %s2509_s28, 1 }
  0x18   : > { %494 = sbr.rel (%p491_p9) target bundleno = 1159 (0x487), region = 88  ;;  %s3772_s2 = sld [smem:[#allocation14_spill]] (!%p491_p9) }
  0x19   : > { %s3773_s16 = sld [smem:[#allocation12_spill]] (!%p491_p9)  ;;  %s539_s24 = sand.u32 (!%p491_p9), 1, %s2388_s25  }
  0x1a   : > { %s1916_s22 = scalar_lea.hbm (!%p491_p9), %s3748_s17, %s2509_s28  ;;  %s1908_s18 = scalar_lea.sflag (!%p491_p9), [#allocation3], %s539_s24 }
  0x1b   : > { %s1920_s27 = sshll.u32 (!%p491_p9), %s1916_s22, 4  ;;  %s1921_s27 = int_to_ptr.hbm [resolvable:$true] %s1920_s27 }
  0x1c   : > { %s2348_s0 = sshra.s32 (!%p491_p9), %s1921_s27, 4  ;;  %s2349_s0 = int_to_ptr.hbm [resolvable:$true] %s2348_s0 }
  0x1d   : > { %v1992_v0 = vld [vmem:[%s3771_s23 + $0xb8] sm:$0xff]  ;;  %v1991_v4 = vld [vmem:[%s3771_s23 + $0xb0] sm:$0xff]  ;;  %v1990_v8 = vld [vmem:[%s3771_s23 + $0xa8] sm:$0xff]  ;;  %s2594_s26 = scalar_select %p541_p10, %s2509_s28, 1  ;;  %vm591_vm0 = vcmask 1046528   ;;  %vm599_vm1 = vcmask 785408  }
  0x1e   : > { %v2008_v1 = vld [vmem:[%s3772_s2 + $0xb8] sm:$0xff]  ;;  %612 = vmatpush.msra.mxu0 %v1992_v0  ;;  %v2007_v5 = vld [vmem:[%s3772_s2 + $0xb0] sm:$0xff]  ;;  %v2006_v9 = vld [vmem:[%s3772_s2 + $0xa8] sm:$0xff]  ;;  %vm758_vm2 = vcmask 1045504   ;;  %vm866_vm3 = vcmask 1044480   ;;  %vm974_vm4 = vcmask 1043456   ;;  %p2355_p0 = scmp.lt.s32.totalorder %s2349_s0, %s3748_s17 }
  0x1f   : > { %v561_v2 = vld [vmem:[%s3771_s23 + $0x58] sm:$0xff]  ;;  %654 = vmatpush.msra.mxu1 %v2008_v1  ;;  %v560_v6 = vld [vmem:[%s3771_s23 + $0x50] sm:$0xff]  ;;  %v559_v10 = vld [vmem:[%s3771_s23 + $0x48] sm:$0xff]  ;;  %s2292_s30 = sshll.u32 %s2594_s26, 5  ;;  %vm1095_vm5 = vcmask 228352   ;;  %vm1200_vm6 = vcmask 687104  }
  0x20   : > { %v573_v3 = vld [vmem:[%s3772_s2 + $0x58] sm:$0xff]  ;;  %691 = vmatpush.msra.mxu2 %v561_v2  ;;  %v572_v7 = vld [vmem:[%s3772_s2 + $0x50] sm:$0xff]  ;;  %613 = vmatpush.msra.mxu0 %v1991_v4  ;;  %v571_v11 = vld [vmem:[%s3772_s2 + $0x48] sm:$0xff]  ;;  %s2642_s1 = scalar_lea.vmem %s3773_s16, %s2292_s30  ;;  %vm1605_vm7 = vcmask 1041408   ;;  %vm1601_vm8 = vcmask 80896   ;;  %vm1665_vm9 = vcmask 654336  }
  0x21   : > { %720 = vmatpush.msra.mxu3 %v573_v3  ;;  %655 = vmatpush.msra.mxu1 %v2007_v5  ;;  %v1989_v12 = vld [vmem:[%s3771_s23 + $0xa0] sm:$0xff]  ;;  %v1988_v16 = vld [vmem:[%s3771_s23 + $0x98] sm:$0xff]  ;;  %v1987_v20 = vld [vmem:[%s3771_s23 + $0x90] sm:$0xff]  ;;  %s3775_s16 = sld [smem:[#allocation15_spill]]  ;;  %s540_s30 = scalar_lea.vmem [#allocation2], %s539_s24 }
  0x22   : > { %692 = vmatpush.msra.mxu2 %v560_v6  ;;  %v2005_v13 = vld [vmem:[%s3772_s2 + $0xa0] sm:$0xff]  ;;  %614 = vmatpush.msra.mxu0 %v1990_v8  ;;  %v2004_v17 = vld [vmem:[%s3772_s2 + $0x98] sm:$0xff]  ;;  %v2003_v21 = vld [vmem:[%s3772_s2 + $0x90] sm:$0xff]  ;;  %s1918_s19 = sshll.u32 %s540_s30, 4  ;;  %s1919_s19 = int_to_ptr.vmem [resolvable:$true] %s1918_s19 }
  0x23   : > { %721 = vmatpush.msra.mxu3 %v572_v7  ;;  %656 = vmatpush.msra.mxu1 %v2006_v9  ;;  %v558_v14 = vld [vmem:[%s3771_s23 + $0x40] sm:$0xff]  ;;  %v557_v18 = vld [vmem:[%s3771_s23 + $0x38] sm:$0xff]  ;;  %v556_v22 = vld [vmem:[%s3771_s23 + $0x30] sm:$0xff] }
  0x24   : > { %v570_v15 = vld [vmem:[%s3772_s2 + $0x40] sm:$0xff]  ;;  %693 = vmatpush.msra.mxu2 %v559_v10  ;;  %615 = vmatpush.msra.mxu0 %v1989_v12  ;;  %v569_v19 = vld [vmem:[%s3772_s2 + $0x38] sm:$0xff]  ;;  %v568_v23 = vld [vmem:[%s3772_s2 + $0x30] sm:$0xff] }
  0x25   : > { %722 = vmatpush.msra.mxu3 %v571_v11  ;;  %657 = vmatpush.msra.mxu1 %v2005_v13  ;;  %v1986_v24 = vld [vmem:[%s3771_s23 + $0x88] sm:$0xff]  ;;  %v1985_v28 = vld [vmem:[%s3771_s23 + $0x80] sm:$0xff]  ;;  %v1984_v32 = vld [vmem:[%s3771_s23 + $0x78] sm:$0xff] }
  0x26   : > { %694 = vmatpush.msra.mxu2 %v558_v14  ;;  %616 = vmatpush.msra.mxu0 %v1988_v16  ;;  %v2002_v25 = vld [vmem:[%s3772_s2 + $0x88] sm:$0xff]  ;;  %v2001_v29 = vld [vmem:[%s3772_s2 + $0x80] sm:$0xff]  ;;  %v2000_v33 = vld [vmem:[%s3772_s2 + $0x78] sm:$0xff] }
  0x27   : > { %723 = vmatpush.msra.mxu3 %v570_v15  ;;  %658 = vmatpush.msra.mxu1 %v2004_v17  ;;  %v555_v26 = vld [vmem:[%s3771_s23 + $0x28] sm:$0xff]  ;;  %v554_v30 = vld [vmem:[%s3771_s23 + $0x20] sm:$0xff]  ;;  %v553_v34 = vld [vmem:[%s3771_s23 + $0x18] sm:$0xff] }
  0x28   : > { %695 = vmatpush.msra.mxu2 %v557_v18  ;;  %617 = vmatpush.msra.mxu0 %v1987_v20  ;;  %v567_v27 = vld [vmem:[%s3772_s2 + $0x28] sm:$0xff]  ;;  %v566_v31 = vld [vmem:[%s3772_s2 + $0x20] sm:$0xff]  ;;  %v565_v35 = vld [vmem:[%s3772_s2 + $0x18] sm:$0xff] }
  0x29   : > { %724 = vmatpush.msra.mxu3 %v569_v19  ;;  %659 = vmatpush.msra.mxu1 %v2003_v21  ;;  %v1983_v36 = vld [vmem:[%s3771_s23 + $0x70] sm:$0xff]  ;;  %v2663_v38 = vld [vmem:[%s2642_s1] sm:$0xff]  ;;  %v2666_v39 = vld [vmem:[%s2642_s1 + $0x8] sm:$0xff] }
  0x2a   : > { %696 = vmatpush.msra.mxu2 %v556_v22  ;;  %618 = vmatpush.msra.mxu0 %v1986_v24  ;;  %v1999_v37 = vld [vmem:[%s3772_s2 + $0x70] sm:$0xff]  ;;  %v1982_v42 = vld [vmem:[%s3771_s23 + $0x68] sm:$0xff]  ;;  %v592_v44 = vrot.slane %v2663_v38, 1  ;;  %v593_v45 = vrot.slane %v2666_v39, 1  ;;  %v1981_v48 = vld [vmem:[%s3771_s23 + $0x60] sm:$0xff] }
  0x2b   : > { %725 = vmatpush.msra.mxu3 %v568_v23  ;;  %660 = vmatpush.msra.mxu1 %v2002_v25  ;;  %v552_v40 = vld [vmem:[%s3771_s23 + $0x10] sm:$0xff]  ;;  %v1998_v43 = vld [vmem:[%s3772_s2 + $0x68] sm:$0xff]  ;;  %v1997_v49 = vld [vmem:[%s3772_s2 + $0x60] sm:$0xff] }
  0x2c   : > { %697 = vmatpush.msra.mxu2 %v555_v26  ;;  %619 = vmatpush.msra.mxu0 %v1985_v28  ;;  %v564_v41 = vld [vmem:[%s3772_s2 + $0x10] sm:$0xff]  ;;  %v551_v46 = vld [vmem:[%s3771_s23 + $0x8] sm:$0xff]  ;;  %v550_v50 = vld [vmem:[%s3771_s23] sm:$0xff]  ;;  %v594_v52 = vsel %vm591_vm0, %v592_v44, %v593_v45  ;;  %v868_v44 = vrot.slane %v2666_v39, 3 }
  0x2d   : > { %726 = vmatpush.msra.mxu3 %v567_v27  ;;  %661 = vmatpush.msra.mxu1 %v2001_v29  ;;  %v563_v47 = vld [vmem:[%s3772_s2 + $0x8] sm:$0xff]  ;;  %v562_v51 = vld [vmem:[%s3772_s2] sm:$0xff]  ;;  %v2702_v53 = vld [vmem:[%s2642_s1 + $0x10] sm:$0xff] }
  0x2e   : > { %698 = vmatpush.msra.mxu2 %v554_v30  ;;  %620 = vmatpush.msra.mxu0 %v1984_v32  ;;  %v2032_v54 = vld [vmem:[%s3771_s23 + $0x118] sm:$0xff]  ;;  %v595_v58 = vrot.slane %v2702_v53, 1  ;;  %v2031_v59 = vld [vmem:[%s3771_s23 + $0x110] sm:$0xff]  ;;  %v2030_v63 = vld [vmem:[%s3771_s23 + $0x108] sm:$0xff] }
  0x2f   : > { %727 = vmatpush.msra.mxu3 %v566_v31  ;;  %662 = vmatpush.msra.mxu1 %v2000_v33  ;;  %v2048_v55 = vld [vmem:[%s3772_s2 + $0x118] sm:$0xff]  ;;  %v2047_v60 = vld [vmem:[%s3772_s2 + $0x110] sm:$0xff]  ;;  %v2046_v0 = vld [vmem:[%s3772_s2 + $0x108] sm:$0xff] }
  0x30   : > { %699 = vmatpush.msra.mxu2 %v553_v34  ;;  %621 = vmatpush.msra.mxu0 %v1983_v36  ;;  %v2064_v56 = vld [vmem:[%s3771_s23 + $0x178] sm:$0xff]  ;;  %v2063_v61 = vld [vmem:[%s3771_s23 + $0x170] sm:$0xff]  ;;  %v2062_v1 = vld [vmem:[%s3771_s23 + $0x168] sm:$0xff]  ;;  %v596_v3 = vsel %vm591_vm0, %v593_v45, %v595_v58 }
  0x31   : > { %728 = vmatpush.msra.mxu3 %v565_v35  ;;  %663 = vmatpush.msra.mxu1 %v1999_v37  ;;  %v2080_v57 = vld [vmem:[%s3772_s2 + $0x178] sm:$0xff]  ;;  %v2079_v62 = vld [vmem:[%s3772_s2 + $0x170] sm:$0xff]  ;;  %v2078_v2 = vld [vmem:[%s3772_s2 + $0x168] sm:$0xff]  ;;  %v759_v37 = vrot.slane %v2663_v38, 2 }
  0x32   : > { %700 = vmatpush.msra.mxu2 %v552_v40  ;;  %622 = vmatpush.msra.mxu0 %v1982_v42  ;;  %v2749_v4 = vld [vmem:[%s2642_s1 + $0x18] sm:$0xff]  ;;  %v2029_v5 = vld [vmem:[%s3771_s23 + $0x100] sm:$0xff]  ;;  %v2027_v14 = vld [vmem:[%s3771_s23 + $0xf0] sm:$0xff]  ;;  %v760_v40 = vrot.slane %v2666_v39, 2  ;;  %s2354_s1 = scalar_lea.hbm %s3748_s17, 2 }
  0x33   : > { %729 = vmatpush.msra.mxu3 %v564_v41  ;;  %664 = vmatpush.msra.mxu1 %v1998_v43  ;;  %v2045_v6 = vld [vmem:[%s3772_s2 + $0x100] sm:$0xff]  ;;  %v597_v9 = vrot.slane %v2749_v4, 1  ;;  %v2028_v10 = vld [vmem:[%s3771_s23 + $0xf8] sm:$0xff]  ;;  %v2043_v15 = vld [vmem:[%s3772_s2 + $0xf0] sm:$0xff]  ;;  %v867_v43 = vrot.slane %v2663_v38, 3 }
  0x34   : > { %701 = vmatpush.msra.mxu2 %v551_v46  ;;  %623 = vmatpush.msra.mxu0 %v1981_v48  ;;  %v2061_v7 = vld [vmem:[%s3771_s23 + $0x160] sm:$0xff]  ;;  %v2044_v11 = vld [vmem:[%s3772_s2 + $0xf8] sm:$0xff]  ;;  %v2059_v16 = vld [vmem:[%s3771_s23 + $0x150] sm:$0xff] }
  0x35   : > { %730 = vmatpush.msra.mxu3 %v563_v47  ;;  %665 = vmatpush.msra.mxu1 %v1997_v49  ;;  %v2077_v8 = vld [vmem:[%s3772_s2 + $0x160] sm:$0xff]  ;;  %v2060_v12 = vld [vmem:[%s3771_s23 + $0x158] sm:$0xff]  ;;  %v2075_v17 = vld [vmem:[%s3772_s2 + $0x150] sm:$0xff]  ;;  %v598_v18 = vsel %vm591_vm0, %v595_v58, %v597_v9  ;;  %v761_v49 = vsel %vm758_vm2, %v759_v37, %v760_v40 }
  0x36   : > { %702 = vmatpush.msra.mxu2 %v550_v50  ;;  %1993 = vmatmul.msk.f32.vlgmr.msra.gmra.mxu0 %vm599_vm1, %v594_v52  ;;  %v2076_v13 = vld [vmem:[%s3772_s2 + $0x158] sm:$0xff]  ;;  %v2026_v19 = vld [vmem:[%s3771_s23 + $0xe8] sm:$0xff]  ;;  %v2025_v23 = vld [vmem:[%s3771_s23 + $0xe0] sm:$0xff]  ;;  %v869_v50 = vsel %vm866_vm3, %v867_v43, %v868_v44 }
  0x37   : > { %731 = vmatpush.msra.mxu3 %v562_v51  ;;  %2009 = vmatmul.msk.f32.vlgmr.msra.gmra.mxu1 %vm599_vm1, %v594_v52  ;;  %v2042_v20 = vld [vmem:[%s3772_s2 + $0xe8] sm:$0xff]  ;;  %v2041_v24 = vld [vmem:[%s3772_s2 + $0xe0] sm:$0xff]  ;;  %v2024_v27 = vld [vmem:[%s3771_s23 + $0xd8] sm:$0xff]  ;;  %v975_v51 = vrot.slane %v2663_v38, 4  ;;  %v976_v52 = vrot.slane %v2666_v39, 4 }
  0x38   : > { %2013 = vmatmul.msk.f32.vlgmr.msra.gmra.mxu2 %vm599_vm1, %v2663_v38  ;;  %2017 = vmatmul.msk.f32.vlgmr.msra.gmra.mxu3 %vm599_vm1, %v2663_v38  ;;  %v2058_v21 = vld [vmem:[%s3771_s23 + $0x148] sm:$0xff]  ;;  %v2057_v25 = vld [vmem:[%s3771_s23 + $0x140] sm:$0xff]  ;;  %v2040_v28 = vld [vmem:[%s3772_s2 + $0xd8] sm:$0xff]  ;;  %v978_v38 = vrot.slane %v2702_v53, 4 }
  0x39   : > { %778 = vmatpush.msrb.mxu0 %v2032_v54  ;;  %820 = vmatpush.msrb.mxu1 %v2048_v55  ;;  %v2074_v22 = vld [vmem:[%s3772_s2 + $0x148] sm:$0xff]  ;;  %v2073_v26 = vld [vmem:[%s3772_s2 + $0x140] sm:$0xff]  ;;  %v2056_v29 = vld [vmem:[%s3771_s23 + $0x138] sm:$0xff] }
  0x3a   : > { %886 = vmatpush.msrb.mxu2 %v2064_v56  ;;  %928 = vmatpush.msrb.mxu3 %v2080_v57  ;;  %v2072_v30 = vld [vmem:[%s3772_s2 + $0x138] sm:$0xff]  ;;  %v2023_v31 = vld [vmem:[%s3771_s23 + $0xd0] sm:$0xff]  ;;  %v2022_v35 = vld [vmem:[%s3771_s23 + $0xc8] sm:$0xff]  ;;  %v2896_v56 = vsel %vm974_vm4, %v975_v51, %v976_v52 }
  0x3b   : > { %779 = vmatpush.msrb.mxu0 %v2031_v59  ;;  %821 = vmatpush.msrb.mxu1 %v2047_v60  ;;  %v2039_v32 = vld [vmem:[%s3772_s2 + $0xd0] sm:$0xff]  ;;  %v2038_v36 = vld [vmem:[%s3772_s2 + $0xc8] sm:$0xff]  ;;  %v2021_v45 = vld [vmem:[%s3771_s23 + $0xc0] sm:$0xff]  ;;  %v870_v59 = vrot.slane %v2702_v53, 3  ;;  %v2910_v60 = vsel %vm974_vm4, %v976_v52, %v978_v38 }
  0x3c   : > { %887 = vmatpush.msrb.mxu2 %v2063_v61  ;;  %929 = vmatpush.msrb.mxu3 %v2079_v62  ;;  %v2055_v33 = vld [vmem:[%s3771_s23 + $0x130] sm:$0xff]  ;;  %v2054_v41 = vld [vmem:[%s3771_s23 + $0x128] sm:$0xff]  ;;  %v2037_v46 = vld [vmem:[%s3772_s2 + $0xc0] sm:$0xff] }
  0x3d   : > { %780 = vmatpush.msrb.mxu0 %v2030_v63  ;;  %822 = vmatpush.msrb.mxu1 %v2046_v0  ;;  %v2071_v34 = vld [vmem:[%s3772_s2 + $0x130] sm:$0xff]  ;;  %v2070_v42 = vld [vmem:[%s3772_s2 + $0x128] sm:$0xff]  ;;  %v2053_v47 = vld [vmem:[%s3771_s23 + $0x120] sm:$0xff]  ;;  %v871_v0 = vsel %vm866_vm3, %v868_v44, %v870_v59 }
  0x3e   : > { %888 = vmatpush.msrb.mxu2 %v2062_v1  ;;  %930 = vmatpush.msrb.mxu3 %v2078_v2  ;;  %v2069_v48 = vld [vmem:[%s3772_s2 + $0x120] sm:$0xff]  ;;  %v2096_v54 = vld [vmem:[%s3771_s23 + $0x1d8] sm:$0xff]  ;;  %v2095_v57 = vld [vmem:[%s3771_s23 + $0x1d0] sm:$0xff]  ;;  %v980_v2 = vrot.slane %v2749_v4, 4 }
  0x3f   : > { %1994 = vmatmul.msk.f32.gmra.mxu0 %vm599_vm1, %v596_v3  ;;  %2010 = vmatmul.msk.f32.gmra.mxu1 %vm599_vm1, %v596_v3  ;;  %v2112_v55 = vld [vmem:[%s3772_s2 + $0x1d8] sm:$0xff]  ;;  %v2111_v58 = vld [vmem:[%s3772_s2 + $0x1d0] sm:$0xff]  ;;  %v2094_v61 = vld [vmem:[%s3771_s23 + $0x1c8] sm:$0xff]  ;;  %v764_v3 = vrot.slane %v2749_v4, 2 }
  0x40   : > { %2014 = vmatmul.msk.f32.gmra.mxu2 %vm599_vm1, %v2666_v39  ;;  %2018 = vmatmul.msk.f32.gmra.mxu3 %vm599_vm1, %v2666_v39  ;;  %v762_v39 = vrot.slane %v2702_v53, 2  ;;  %v2110_v62 = vld [vmem:[%s3772_s2 + $0x1c8] sm:$0xff]  ;;  %v2109_v1 = vld [vmem:[%s3772_s2 + $0x1c0] sm:$0xff] }
  0x41   : > { %781 = vmatpush.msrb.mxu0 %v2029_v5  ;;  %823 = vmatpush.msrb.mxu1 %v2045_v6  ;;  %v2092_v5 = vld [vmem:[%s3771_s23 + $0x1b8] sm:$0xff] }
  0x42   : > { %889 = vmatpush.msrb.mxu2 %v2061_v7  ;;  %931 = vmatpush.msrb.mxu3 %v2077_v8  ;;  %v763_v63 = vsel %vm758_vm2, %v760_v40, %v762_v39  ;;  %v2108_v6 = vld [vmem:[%s3772_s2 + $0x1b8] sm:$0xff]  ;;  %v872_v7 = vrot.slane %v2749_v4, 3  ;;  %v981_v8 = vsel %vm974_vm4, %v978_v38, %v980_v2 }
  0x43   : > { %782 = vmatpush.msrb.mxu0 %v2028_v10  ;;  %824 = vmatpush.msrb.mxu1 %v2044_v11  ;;  %v2107_v10 = vld [vmem:[%s3772_s2 + $0x1b0] sm:$0xff]  ;;  %v765_v11 = vsel %vm758_vm2, %v762_v39, %v764_v3 }
  0x44   : > { %890 = vmatpush.msrb.mxu2 %v2060_v12  ;;  %932 = vmatpush.msrb.mxu3 %v2076_v13  ;;  %v873_v12 = vsel %vm866_vm3, %v870_v59, %v872_v7  ;;  %v2106_v13 = vld [vmem:[%s3772_s2 + $0x1a8] sm:$0xff]  ;;  %v3015_v59 = vld [vmem:[%s3734_s3] ss:$0 sm:$0xff] }
  0x45   : > { %783 = vmatpush.msrb.mxu0 %v2027_v14  ;;  %825 = vmatpush.msrb.mxu1 %v2043_v15  ;;  %v2089_v14 = vld [vmem:[%s3771_s23 + $0x1a0] sm:$0xff] }
  0x46   : > { %891 = vmatpush.msrb.mxu2 %v2059_v16  ;;  %933 = vmatpush.msrb.mxu3 %v2075_v17  ;;  %v2105_v15 = vld [vmem:[%s3772_s2 + $0x1a0] sm:$0xff]  ;;  %v2088_v16 = vld [vmem:[%s3771_s23 + $0x198] sm:$0xff] }
  0x47   : > { %1995 = vmatmul.msk.f32.gmra.mxu0 %vm599_vm1, %v598_v18  ;;  %2011 = vmatmul.msk.f32.gmra.mxu1 %vm599_vm1, %v598_v18  ;;  %v2104_v17 = vld [vmem:[%s3772_s2 + $0x198] sm:$0xff]  ;;  %v2087_v18 = vld [vmem:[%s3771_s23 + $0x190] sm:$0xff] }
  0x48   : > { %2015 = vmatmul.msk.f32.gmra.mxu2 %vm599_vm1, %v2702_v53  ;;  %2019 = vmatmul.msk.f32.gmra.mxu3 %vm599_vm1, %v2702_v53  ;;  %v2093_v53 = vld [vmem:[%s3771_s23 + $0x1c0] sm:$0xff] }
  0x49   : > { %784 = vmatpush.msrb.mxu0 %v2026_v19  ;;  %826 = vmatpush.msrb.mxu1 %v2042_v20  ;;  %v2103_v19 = vld [vmem:[%s3772_s2 + $0x190] sm:$0xff]  ;;  %v2086_v20 = vld [vmem:[%s3771_s23 + $0x188] sm:$0xff] }
  0x4a   : > { %892 = vmatpush.msrb.mxu2 %v2058_v21  ;;  %934 = vmatpush.msrb.mxu3 %v2074_v22  ;;  %v2102_v21 = vld [vmem:[%s3772_s2 + $0x188] sm:$0xff]  ;;  %v2085_v22 = vld [vmem:[%s3771_s23 + $0x180] sm:$0xff] }
  0x4b   : > { %785 = vmatpush.msrb.mxu0 %v2025_v23  ;;  %827 = vmatpush.msrb.mxu1 %v2041_v24  ;;  %v2101_v23 = vld [vmem:[%s3772_s2 + $0x180] sm:$0xff]  ;;  %s2350_s2 = scalar_lea.hbm %s2349_s0, 1 }
  0x4c   : > { %893 = vmatpush.msrb.mxu2 %v2057_v25  ;;  %935 = vmatpush.msrb.mxu3 %v2073_v26  ;;  %p2351_p11 = scmp.ne.s32.totalorder %s2349_s0, %s2350_s2  ;;  %p2356_p1 = scmp.lt.s32.totalorder %s2354_s1, %s2350_s2 }
  0x4d   : > { %786 = vmatpush.msrb.mxu0 %v2024_v27  ;;  %828 = vmatpush.msrb.mxu1 %v2040_v28 }
  0x4e   : > { %894 = vmatpush.msrb.mxu2 %v2056_v29  ;;  %936 = vmatpush.msrb.mxu3 %v2072_v30  ;;  %p2352_p12 = pnand %p2351_p11, %p2526_p5  ;;  %p2357_p2 = por %p2356_p1, %p2355_p0 }
  0x4f   : > { %1996 = vmatmul.msk.f32.gmra.mxu0 %vm599_vm1, %v597_v9  ;;  %2012 = vmatmul.msk.f32.gmra.mxu1 %vm599_vm1, %v597_v9  ;;  %v2091_v9 = vld [vmem:[%s3771_s23 + $0x1b0] sm:$0xff] }
  0x50   : > { %2016 = vmatmul.msk.f32.gmra.mxu2 %vm599_vm1, %v2749_v4  ;;  %2020 = vmatmul.msk.f32.gmra.mxu3 %vm599_vm1, %v2749_v4  ;;  %v2090_v4 = vld [vmem:[%s3771_s23 + $0x1a8] sm:$0xff]  ;;  %p2353_p13 = pneg %p2352_p12 }
  0x51   : > { %787 = vmatpush.msrb.mxu0 %v2023_v31  ;;  %829 = vmatpush.msrb.mxu1 %v2039_v32 }
  0x52   : > { %895 = vmatpush.msrb.mxu2 %v2055_v33  ;;  %937 = vmatpush.msrb.mxu3 %v2071_v34  ;;  %p2358_p3 = pnand %p2357_p2, %p2353_p13 }
  0x53   : > { %788 = vmatpush.msrb.mxu0 %v2022_v35  ;;  %830 = vmatpush.msrb.mxu1 %v2038_v36 }
  0x54   : > { %896 = vmatpush.msrb.mxu2 %v2054_v41  ;;  %938 = vmatpush.msrb.mxu3 %v2070_v42 }
  0x55   : > { %789 = vmatpush.msrb.mxu0 %v2021_v45  ;;  %831 = vmatpush.msrb.mxu1 %v2037_v46 }
  0x56   : > { %897 = vmatpush.msrb.mxu2 %v2053_v47  ;;  %939 = vmatpush.msrb.mxu3 %v2069_v48 }
  0x57   : > { %2033 = vmatmul.msk.f32.vlgmr.msrb.gmra.mxu0 %vm599_vm1, %v761_v49  ;;  %2049 = vmatmul.msk.f32.vlgmr.msrb.gmra.mxu1 %vm599_vm1, %v761_v49 }
  0x58   : > { %2065 = vmatmul.msk.f32.vlgmr.msrb.gmra.mxu2 %vm599_vm1, %v869_v50  ;;  %2081 = vmatmul.msk.f32.vlgmr.msrb.gmra.mxu3 %vm599_vm1, %v869_v50 }
  0x59   : > { %994 = vmatpush.msra.mxu0 %v2096_v54  ;;  %1036 = vmatpush.msra.mxu1 %v2112_v55 }
  0x5b   : > { %995 = vmatpush.msra.mxu0 %v2095_v57  ;;  %1037 = vmatpush.msra.mxu1 %v2111_v58 }
  0x5d   : > { %996 = vmatpush.msra.mxu0 %v2094_v61  ;;  %1038 = vmatpush.msra.mxu1 %v2110_v62 }
  0x5f   : > { %2034 = vmatmul.msk.f32.gmra.mxu0 %vm599_vm1, %v763_v63  ;;  %2050 = vmatmul.msk.f32.gmra.mxu1 %vm599_vm1, %v763_v63 }
  0x60   : > { %2066 = vmatmul.msk.f32.gmra.mxu2 %vm599_vm1, %v871_v0  ;;  %2082 = vmatmul.msk.f32.gmra.mxu3 %vm599_vm1, %v871_v0 }
  0x61   : > { %997 = vmatpush.msra.mxu0 %v2093_v53  ;;  %1039 = vmatpush.msra.mxu1 %v2109_v1 }
  0x63   : > { %998 = vmatpush.msra.mxu0 %v2092_v5  ;;  %1040 = vmatpush.msra.mxu1 %v2108_v6 }
  0x65   : > { %999 = vmatpush.msra.mxu0 %v2091_v9  ;;  %1041 = vmatpush.msra.mxu1 %v2107_v10 }
  0x67   : > { %2035 = vmatmul.msk.f32.gmra.mxu0 %vm599_vm1, %v765_v11  ;;  %2051 = vmatmul.msk.f32.gmra.mxu1 %vm599_vm1, %v765_v11 }
  0x68   : > { %2067 = vmatmul.msk.f32.gmra.mxu2 %vm599_vm1, %v873_v12  ;;  %2083 = vmatmul.msk.f32.gmra.mxu3 %vm599_vm1, %v873_v12 }
  0x69   : > { %1000 = vmatpush.msra.mxu0 %v2090_v4  ;;  %1042 = vmatpush.msra.mxu1 %v2106_v13 }
  0x6b   : > { %1001 = vmatpush.msra.mxu0 %v2089_v14  ;;  %1043 = vmatpush.msra.mxu1 %v2105_v15 }
  0x6d   : > { %1002 = vmatpush.msra.mxu0 %v2088_v16  ;;  %1044 = vmatpush.msra.mxu1 %v2104_v17 }
  0x6f   : > { %2036 = vmatmul.msk.f32.gmra.mxu0 %vm599_vm1, %v764_v3  ;;  %2052 = vmatmul.msk.f32.gmra.mxu1 %vm599_vm1, %v764_v3 }
  0x70   : > { %2068 = vmatmul.msk.f32.gmra.mxu2 %vm599_vm1, %v872_v7  ;;  %2084 = vmatmul.msk.f32.gmra.mxu3 %vm599_vm1, %v872_v7 }
  0x71   : > { %1003 = vmatpush.msra.mxu0 %v2087_v18  ;;  %1045 = vmatpush.msra.mxu1 %v2103_v19 }
  0x73   : > { %1004 = vmatpush.msra.mxu0 %v2086_v20  ;;  %1046 = vmatpush.msra.mxu1 %v2102_v21 }
  0x75   : > { %1005 = vmatpush.msra.mxu0 %v2085_v22  ;;  %1047 = vmatpush.msra.mxu1 %v2101_v23 }
  0x77   : > { %2097 = vmatmul.msk.f32.vlgmr.msra.gmra.mxu0 %vm599_vm1, %v2896_v56  ;;  %2113 = vmatmul.msk.f32.vlgmr.msra.gmra.mxu1 %vm599_vm1, %v2896_v56 }
  0x7f   : > { %2098 = vmatmul.msk.f32.gmra.mxu0 %vm599_vm1, %v2910_v60  ;;  %2114 = vmatmul.msk.f32.gmra.mxu1 %vm599_vm1, %v2910_v60 }
  0x87   : > { %2099 = vmatmul.msk.f32.gmra.mxu0 %vm599_vm1, %v981_v8  ;;  %2115 = vmatmul.msk.f32.gmra.mxu1 %vm599_vm1, %v981_v8 }
  0x8f   : > { %2100 = vmatmul.msk.f32.gmra.mxu0 %vm599_vm1, %v980_v2  ;;  %2116 = vmatmul.msk.f32.gmra.mxu1 %vm599_vm1, %v980_v2 }
  0xb3   : > { %v625_v24 = vpop.f32.mrf.mxu0 }
  0xb4   : > { %v667_v25 = vpop.f32.mrf.mxu1 }
  0xbb   : > { %v704_v28 = vpop.f32.mrf.mxu2  ;;  %v733_v29 = vpop.f32.mrf.mxu3 }
  0xbc   : > { %v628_v26 = vpop.f32.mrf.mxu0  ;;  %v670_v27 = vpop.f32.mrf.mxu1  ;;  %v705_v52 = vadd.f32 %v704_v28, %v625_v24  ;;  %v734_v54 = vadd.f32 %v733_v29, %v667_v25  ;;  %v1171_v29 = vld [vmem:[%s3737_s6 + $0x50] sm:$0xf] }
  0xbd   : > { %2151 = vmatpush.msk.msrb.mxu0 %vm974_vm4, %v1171_v29  ;;  %v2127_v29 = vld [vmem:[%s3737_s6 + $0x78] sm:$0xff] }
  0xc3   : > { %v707_v32 = vpop.f32.mrf.mxu2  ;;  %v736_v33 = vpop.f32.mrf.mxu3 }
  0xc4   : > { %v631_v30 = vpop.f32.mrf.mxu0  ;;  %v673_v31 = vpop.f32.mrf.mxu1  ;;  %v708_v0 = vadd.f32 %v707_v32, %v628_v26  ;;  %v737_v53 = vadd.f32 %v736_v33, %v670_v27  ;;  %v1170_v33 = vld [vmem:[%s3737_s6 + $0x48] sm:$0xff] }
  0xc5   : > { %1282 = vmatpush.msrb.mxu0 %v1170_v33  ;;  %v2125_v33 = vld [vmem:[%s3737_s6 + $0x68] sm:$0xff] }
  0xcb   : > { %v710_v40 = vpop.f32.mrf.mxu2  ;;  %v739_v41 = vpop.f32.mrf.mxu3 }
  0xcc   : > { %v3004_v34 = vpop.f32.mrf.mxu0  ;;  %v3006_v35 = vpop.f32.mrf.mxu1  ;;  %v711_v16 = vadd.f32 %v710_v40, %v631_v30  ;;  %v740_v17 = vadd.f32 %v739_v41, %v673_v31  ;;  %v1182_v30 = vld [vmem:[%s3738_s7 + $0x50] sm:$0xf]  ;;  %v1169_v40 = vld [vmem:[%s3737_s6 + $0x40] sm:$0xff] }
  0xcd   : > { %2154 = vmatpush.msk.msrb.mxu1 %vm974_vm4, %v1182_v30  ;;  %v1180_v41 = vld [vmem:[%s3738_s7 + $0x40] sm:$0xff]  ;;  %1283 = vmatpush.msrb.mxu0 %v1169_v40  ;;  %v2141_v30 = vld [vmem:[%s3738_s7 + $0x78] sm:$0xff]  ;;  %v2208_v40 = vld [vmem:[%s3738_s7 + $0x150] sm:$0xff] }
  0xd3   : > { %v713_v44 = vpop.f32.mrf.mxu2  ;;  %v742_v45 = vpop.f32.mrf.mxu3 }
  0xd4   : > { %v791_v36 = vpop.f32.mrf.mxu0  ;;  %v833_v37 = vpop.f32.mrf.mxu1 }
  0xd5   : > { %v845_v55 = vadd.f32 %v791_v36, %v705_v52  ;;  %v849_v56 = vadd.f32 %v833_v37, %v734_v54  ;;  %v1181_v36 = vld [vmem:[%s3738_s7 + $0x48] sm:$0xff]  ;;  %v714_v37 = vadd.f32 %v713_v44, %v3004_v34  ;;  %v1168_v34 = vld [vmem:[%s3737_s6 + $0x38] sm:$0xff]  ;;  %v1167_v54 = vld [vmem:[%s3737_s6 + $0x30] sm:$0xff] }
  0xd6   : > { %1308 = vmatpush.msrb.mxu1 %v1181_v36  ;;  %v1179_v44 = vld [vmem:[%s3738_s7 + $0x38] sm:$0xff]  ;;  %1284 = vmatpush.msrb.mxu0 %v1168_v34  ;;  %v2139_v36 = vld [vmem:[%s3738_s7 + $0x68] sm:$0xff]  ;;  %v2167_v34 = vld [vmem:[%s3737_s6 + $0x100] sm:$0xf] }
  0xd8   : > { %1309 = vmatpush.msrb.mxu1 %v1180_v41  ;;  %1285 = vmatpush.msrb.mxu0 %v1167_v54  ;;  %v2124_v41 = vld [vmem:[%s3737_s6 + $0x60] sm:$0xff]  ;;  %v2191_v54 = vld [vmem:[%s3737_s6 + $0x138] sm:$0xff] }
  0xda   : > { %1310 = vmatpush.msrb.mxu1 %v1179_v44  ;;  %v2181_v44 = vld [vmem:[%s3738_s7 + $0x100] sm:$0xf] }
  0xdb   : > { %v899_v48 = vpop.f32.mrf.mxu2  ;;  %v941_v49 = vpop.f32.mrf.mxu3 }
  0xdc   : > { %v794_v42 = vpop.f32.mrf.mxu0  ;;  %v836_v43 = vpop.f32.mrf.mxu1  ;;  %v953_v38 = vadd.f32 %v899_v48, %v845_v55  ;;  %v957_v39 = vadd.f32 %v941_v49, %v849_v56  ;;  %v1178_v55 = vld [vmem:[%s3738_s7 + $0x30] sm:$0xff] }
  0xdd   : > { %v846_v3 = vadd.f32 %v794_v42, %v708_v0  ;;  %v850_v5 = vadd.f32 %v836_v43, %v737_v53  ;;  %v743_v42 = vadd.f32 %v742_v45, %v3006_v35  ;;  %1311 = vmatpush.msrb.mxu1 %v1178_v55  ;;  %v2205_v55 = vld [vmem:[%s3738_s7 + $0x138] sm:$0xff] }
  0xe3   : > { %v902_v57 = vpop.f32.mrf.mxu2  ;;  %v944_v58 = vpop.f32.mrf.mxu3 }
  0xe4   : > { %v797_v46 = vpop.f32.mrf.mxu0  ;;  %v839_v47 = vpop.f32.mrf.mxu1  ;;  %v954_v8 = vadd.f32 %v902_v57, %v846_v3  ;;  %v958_v9 = vadd.f32 %v944_v58, %v850_v5  ;;  %v1177_v58 = vld [vmem:[%s3738_s7 + $0x28] sm:$0xff] }
  0xe5   : > { %v847_v20 = vadd.f32 %v797_v46, %v711_v16  ;;  %v851_v21 = vadd.f32 %v839_v47, %v740_v17  ;;  %1312 = vmatpush.msrb.mxu1 %v1177_v58  ;;  %v2195_v16 = vld [vmem:[%s3737_s6 + $0x158] sm:$0xf]  ;;  %v2189_v58 = vld [vmem:[%s3737_s6 + $0x128] sm:$0xff] }
  0xe6   : > { %v2209_v17 = vld [vmem:[%s3738_s7 + $0x158] sm:$0xf] }
  0xeb   : > { %v905_v14 = vpop.f32.mrf.mxu2  ;;  %v947_v15 = vpop.f32.mrf.mxu3 }
  0xec   : > { %v3008_v50 = vpop.f32.mrf.mxu0  ;;  %v3010_v51 = vpop.f32.mrf.mxu1  ;;  %v955_v24 = vadd.f32 %v905_v14, %v847_v20  ;;  %v959_v25 = vadd.f32 %v947_v15, %v851_v21  ;;  %v2133_v14 = vld [vmem:[%s3737_s6 + $0xa8] sm:$0xf]  ;;  %v2145_v20 = vld [vmem:[%s3738_s7 + $0x98] sm:$0xff]  ;;  %v2130_v21 = vld [vmem:[%s3737_s6 + $0x90] sm:$0xff] }
  0xed   : > { %v848_v49 = vadd.f32 %v3008_v50, %v714_v37  ;;  %v852_v35 = vadd.f32 %v3010_v51, %v743_v42  ;;  %v1166_v51 = vld [vmem:[%s3737_s6 + $0x28] sm:$0xff]  ;;  %v2194_v37 = vld [vmem:[%s3737_s6 + $0x150] sm:$0xff]  ;;  %v2138_v42 = vld [vmem:[%s3738_s7 + $0x60] sm:$0xff] }
  0xee   : > { %1286 = vmatpush.msrb.mxu0 %v1166_v51  ;;  %v2147_v15 = vld [vmem:[%s3738_s7 + $0xa8] sm:$0xf] }
  0xef   : > { %v2178_v51 = vld [vmem:[%s3738_s7 + $0xe8] sm:$0xff] }
  0xf3   : > { %v908_v47 = vpop.f32.mrf.mxu2  ;;  %v950_v48 = vpop.f32.mrf.mxu3 }
  0xf4   : > { %v1007_v60 = vpop.f32.mrf.mxu0  ;;  %v1049_v61 = vpop.f32.mrf.mxu1  ;;  %v956_v56 = vadd.f32 %v908_v47, %v848_v49  ;;  %v2123_v47 = vld [vmem:[%s3737_s6 + $0x58] sm:$0xff]  ;;  %v2192_v49 = vld [vmem:[%s3737_s6 + $0x140] sm:$0xff] }
  0xf5   : > { %v1061_v62 = vadd.f32 %v1007_v60, %v953_v38  ;;  %v1065_v63 = vadd.f32 %v1049_v61, %v957_v39  ;;  %v960_v38 = vadd.f32 %v950_v48, %v852_v35  ;;  %v2137_v48 = vld [vmem:[%s3738_s7 + $0x58] sm:$0xff]  ;;  %v2206_v35 = vld [vmem:[%s3738_s7 + $0x140] sm:$0xff] }
  0xf7   : > { %v1073_v1 = vadd.f32 %v3015_v59, %v1061_v62  ;;  %v1081_v2 = vadd.f32 %v3015_v59, %v1065_v63  ;;  %v1165_v62 = vld [vmem:[%s3737_s6 + $0x20] sm:$0xff] }
  0xf8   : > { %v1176_v63 = vld [vmem:[%s3738_s7 + $0x20] sm:$0xff]  ;;  %1287 = vmatpush.msrb.mxu0 %v1165_v62 }
  0xf9   : > { %v1077_v6 = vmax.f32 %v1073_v1, 0.0  ;;  %v1085_v7 = vmax.f32 %v1081_v2, 0.0  ;;  %v1164_v1 = vld [vmem:[%s3737_s6 + $0x18] sm:$0xff]  ;;  %1313 = vmatpush.msrb.mxu1 %v1176_v63  ;;  %v2177_v62 = vld [vmem:[%s3738_s7 + $0xe0] sm:$0xff] }
  0xfa   : > { %v1175_v2 = vld [vmem:[%s3738_s7 + $0x18] sm:$0xff]  ;;  %1288 = vmatpush.msrb.mxu0 %v1164_v1  ;;  %v2188_v63 = vld [vmem:[%s3737_s6 + $0x120] sm:$0xff] }
  0xfb   : > { %v3019_v10 = vmax.f32 %v1077_v6, %v1085_v7  ;;  %1314 = vmatpush.msrb.mxu1 %v1175_v2  ;;  %v1174_v7 = vld [vmem:[%s3738_s7 + $0x10] sm:$0xff]  ;;  %v2176_v1 = vld [vmem:[%s3738_s7 + $0xd8] sm:$0xff] }
  0xfc   : > { %v1010_v11 = vpop.f32.mrf.mxu0  ;;  %v1052_v12 = vpop.f32.mrf.mxu1  ;;  %v2187_v2 = vld [vmem:[%s3737_s6 + $0x118] sm:$0xff] }
  0xfd   : > { %v1062_v4 = vadd.f32 %v1010_v11, %v954_v8  ;;  %v1066_v13 = vadd.f32 %v1052_v12, %v958_v9  ;;  %v1162_v8 = vld [vmem:[%s3737_s6 + $0x8] sm:$0xff]  ;;  %1315 = vmatpush.msrb.mxu1 %v1174_v7  ;;  %v1161_v11 = vld [vmem:[%s3737_s6] sm:$0xff]  ;;  %v2200_v7 = vld [vmem:[%s3738_s7 + $0x110] sm:$0xff] }
  0xfe   : > { %v1173_v9 = vld [vmem:[%s3738_s7 + $0x8] sm:$0xff]  ;;  %v1172_v12 = vld [vmem:[%s3738_s7] sm:$0xff] }
  0xff   : > { %v1074_v18 = vadd.f32 %v3015_v59, %v1062_v4  ;;  %v1082_v19 = vadd.f32 %v3015_v59, %v1066_v13  ;;  %1316 = vmatpush.msrb.mxu1 %v1173_v9  ;;  %v1093_v4 = vld [vmem:[%s3735_s4] sm:$0xff]  ;;  %v2174_v9 = vld [vmem:[%s3738_s7 + $0xc8] sm:$0xff] }
 0x100   : > { %v1128_v13 = vld [vmem:[%s3736_s5] sm:$0xff] }
 0x101   : > { %v1078_v22 = vmax.f32 %v1074_v18, 0.0  ;;  %v1086_v23 = vmax.f32 %v1082_v19, 0.0  ;;  %1317 = vmatpush.msrb.mxu1 %v1172_v12  ;;  %v2132_v18 = vld [vmem:[%s3737_s6 + $0xa0] sm:$0xff]  ;;  %v2131_v19 = vld [vmem:[%s3737_s6 + $0x98] sm:$0xff]  ;;  %v2199_v12 = vld [vmem:[%s3738_s7 + $0x108] sm:$0xff] }
 0x103   : > { %v3023_v26 = vmax.f32 %v1078_v22, %v1086_v23  ;;  %2210 = vmatpush.msk.msra.mxu1 %vm974_vm4, %v2209_v17  ;;  %v2144_v22 = vld [vmem:[%s3738_s7 + $0x90] sm:$0xff]  ;;  %v1094_v23 = vld [vmem:[%s3735_s4 + $0x8] sm:$0x3f] }
 0x104   : > { %v1013_v27 = vpop.f32.mrf.mxu0  ;;  %v1055_v28 = vpop.f32.mrf.mxu1  ;;  %v2171_v17 = vld [vmem:[%s3738_s7 + $0xb0] sm:$0xff] }
 0x105   : > { %v1063_v31 = vadd.f32 %v1013_v27, %v955_v24  ;;  %v1067_v32 = vadd.f32 %v1055_v28, %v959_v25  ;;  %v1129_v24 = vld [vmem:[%s3736_s5 + $0x8] sm:$0x3f]  ;;  %v2128_v27 = vld [vmem:[%s3737_s6 + $0x80] sm:$0xff]  ;;  %1478 = vmatpush.msra.mxu1 %v2208_v40  ;;  %v2234_v40 = vld [vmem:[%s3738_s7 + $0x198] sm:$0xff] }
 0x106   : > { %v2129_v25 = vld [vmem:[%s3737_s6 + $0x88] sm:$0xff]  ;;  %v2142_v28 = vld [vmem:[%s3738_s7 + $0x80] sm:$0xff] }
 0x107   : > { %v1075_v43 = vadd.f32 %v3015_v59, %v1063_v31  ;;  %v1083_v46 = vadd.f32 %v3015_v59, %v1067_v32  ;;  %v2126_v31 = vld [vmem:[%s3737_s6 + $0x70] sm:$0xff] }
 0x108   : > { %v2140_v32 = vld [vmem:[%s3738_s7 + $0x70] sm:$0xff] }
 0x109   : > { %v1079_v45 = vmax.f32 %v1075_v43, 0.0  ;;  %v1087_v52 = vmax.f32 %v1083_v46, 0.0  ;;  %v2193_v43 = vld [vmem:[%s3737_s6 + $0x148] sm:$0xff] }
 0x10a   : > { %v2207_v46 = vld [vmem:[%s3738_s7 + $0x148] sm:$0xff] }
 0x10b   : > { %v1091_v39 = vmax.f32 %v1079_v45, %v1087_v52  ;;  %1479 = vmatpush.msra.mxu1 %v2207_v46  ;;  %v2166_v45 = vld [vmem:[%s3737_s6 + $0xf8] sm:$0xff]  ;;  %v2218_v46 = vld [vmem:[%s3737_s6 + $0x188] sm:$0xff] }
 0x10c   : > { %v1016_v50 = vpop.f32.mrf.mxu0  ;;  %v1058_v57 = vpop.f32.mrf.mxu1  ;;  %v2180_v52 = vld [vmem:[%s3738_s7 + $0xf8] sm:$0xff] }
 0x10d   : > { %v1064_v60 = vadd.f32 %v1016_v50, %v956_v56  ;;  %v1068_v61 = vadd.f32 %v1058_v57, %v960_v38  ;;  %1480 = vmatpush.msra.mxu1 %v2206_v35  ;;  %v2165_v56 = vld [vmem:[%s3737_s6 + $0xf0] sm:$0xff]  ;;  %v2164_v57 = vld [vmem:[%s3737_s6 + $0xe8] sm:$0xff]  ;;  %v2216_v35 = vld [vmem:[%s3737_s6 + $0x178] sm:$0xff] }
 0x10e   : > { %v2179_v38 = vld [vmem:[%s3738_s7 + $0xf0] sm:$0xff] }
 0x10f   : > { %v1076_v0 = vadd.f32 %v3015_v59, %v1064_v60  ;;  %v1084_v53 = vadd.f32 %v3015_v59, %v1068_v61  ;;  %v1163_v59 = vld [vmem:[%s3737_s6 + $0x10] sm:$0xff]  ;;  %1481 = vmatpush.msra.mxu1 %v2205_v55  ;;  %v2203_v60 = vld [vmem:[%s3738_s7 + $0x128] sm:$0xff]  ;;  %v2163_v61 = vld [vmem:[%s3737_s6 + $0xe0] sm:$0xff] }
 0x110   : > { %1289 = vmatpush.msrb.mxu0 %v1163_v59  ;;  %v2204_v50 = vld [vmem:[%s3738_s7 + $0x130] sm:$0xff]  ;;  %v2214_v55 = vld [vmem:[%s3737_s6 + $0x168] sm:$0xff] }
 0x111   : > { %v1080_v3 = vmax.f32 %v1076_v0, 0.0  ;;  %v1088_v5 = vmax.f32 %v1084_v53, 0.0  ;;  %1482 = vmatpush.msra.mxu1 %v2204_v50  ;;  %v2202_v0 = vld [vmem:[%s3738_s7 + $0x120] sm:$0xff]  ;;  %v2162_v53 = vld [vmem:[%s3737_s6 + $0xd8] sm:$0xff]  ;;  %v2186_v59 = vld [vmem:[%s3737_s6 + $0x110] sm:$0xff] }
 0x112   : > { %1290 = vmatpush.msrb.mxu0 %v1162_v8  ;;  %v2160_v8 = vld [vmem:[%s3737_s6 + $0xc8] sm:$0xff] }
 0x113   : > { %v1092_v6 = vmax.f32 %v1080_v3, %v1088_v5  ;;  %1483 = vmatpush.msra.mxu1 %v2203_v60  ;;  %v2201_v3 = vld [vmem:[%s3738_s7 + $0x118] sm:$0xff]  ;;  %v2161_v5 = vld [vmem:[%s3737_s6 + $0xd0] sm:$0xff] }
 0x114   : > { %1291 = vmatpush.msrb.mxu0 %v1161_v11  ;;  %v2185_v11 = vld [vmem:[%s3737_s6 + $0x108] sm:$0xff] }
 0x115   : > { %2117 = vmatpush.msk.msra.mxu2 %vm974_vm4, %v1092_v6  ;;  %2120 = vmatpush.msk.msra.mxu3 %vm974_vm4, %v1092_v6  ;;  %v2175_v6 = vld [vmem:[%s3738_s7 + $0xd0] sm:$0xff] }
 0x116   : > { %2196 = vmatpush.msk.msra.mxu0 %vm974_vm4, %v2195_v16  ;;  %1484 = vmatpush.msra.mxu1 %v2202_v0  ;;  %v2157_v16 = vld [vmem:[%s3737_s6 + $0xb0] sm:$0xff] }
 0x117   : > { %1118 = vmatpush.msra.mxu2 %v1091_v39  ;;  %1149 = vmatpush.msra.mxu3 %v1091_v39  ;;  %v2190_v39 = vld [vmem:[%s3737_s6 + $0x130] sm:$0xff] }
 0x118   : > { %1440 = vmatpush.msra.mxu0 %v2194_v37  ;;  %1485 = vmatpush.msra.mxu1 %v2201_v3  ;;  %v2220_v37 = vld [vmem:[%s3737_s6 + $0x198] sm:$0xff] }
 0x119   : > { %1119 = vmatpush.msra.mxu2 %v3023_v26  ;;  %1150 = vmatpush.msra.mxu3 %v3023_v26  ;;  %v2143_v26 = vld [vmem:[%s3738_s7 + $0x88] sm:$0xff] }
 0x11a   : > { %1441 = vmatpush.msra.mxu0 %v2193_v43  ;;  %1486 = vmatpush.msra.mxu1 %v2200_v7 }
 0x11b   : > { %1120 = vmatpush.msra.mxu2 %v3019_v10  ;;  %1151 = vmatpush.msra.mxu3 %v3019_v10  ;;  %v2146_v10 = vld [vmem:[%s3738_s7 + $0xa0] sm:$0xff] }
 0x11c   : > { %2118 = vmatmul.msk.f32.vlgmr.msra.gmra.mxu2 %vm1095_vm5, %v1093_v4  ;;  %2121 = vmatmul.msk.f32.vlgmr.msra.gmra.mxu3 %vm1095_vm5, %v1128_v13  ;;  %v2159_v4 = vld [vmem:[%s3737_s6 + $0xc0] sm:$0xff] }
 0x11d   : > { %2134 = vmatpush.msk.msrb.mxu2 %vm974_vm4, %v2133_v14  ;;  %2148 = vmatpush.msk.msrb.mxu3 %vm974_vm4, %v2147_v15  ;;  %v2173_v13 = vld [vmem:[%s3738_s7 + $0xc0] sm:$0xff]  ;;  %v2158_v14 = vld [vmem:[%s3737_s6 + $0xb8] sm:$0xff] }
 0x11e   : > { %1442 = vmatpush.msra.mxu0 %v2192_v49  ;;  %1487 = vmatpush.msra.mxu1 %v2199_v12  ;;  %v2172_v15 = vld [vmem:[%s3738_s7 + $0xb8] sm:$0xff]  ;;  %v1663_v12 = vld [vmem:[%s3742_s11 + $0x40] sm:$0xff] }
 0x11f   : > { %1214 = vmatpush.msrb.mxu2 %v2132_v18  ;;  %1252 = vmatpush.msrb.mxu3 %v2146_v10 }
 0x120   : > { %1443 = vmatpush.msra.mxu0 %v2191_v54  ;;  %v2229_v54 = vld [vmem:[%s3738_s7 + $0x170] sm:$0xff] }
 0x121   : > { %1215 = vmatpush.msrb.mxu2 %v2131_v19  ;;  %1253 = vmatpush.msrb.mxu3 %v2145_v20 }
 0x122   : > { %1444 = vmatpush.msra.mxu0 %v2190_v39  ;;  %v2227_v39 = vld [vmem:[%s3738_s7 + $0x160] sm:$0xff] }
 0x123   : > { %1216 = vmatpush.msrb.mxu2 %v2130_v21  ;;  %1254 = vmatpush.msrb.mxu3 %v2144_v22 }
 0x124   : > { %2119 = vmatmul.msk.f32.gmra.mxu2 %vm1095_vm5, %v1094_v23  ;;  %2122 = vmatmul.msk.f32.gmra.mxu3 %vm1095_vm5, %v1129_v24 }
 0x125   : > { %1217 = vmatpush.msrb.mxu2 %v2129_v25  ;;  %1255 = vmatpush.msrb.mxu3 %v2143_v26  ;;  %v2223_v25 = vld [vmem:[%s3737_s6 + $0x1b0] sm:$0xf] }
 0x126   : > { %1445 = vmatpush.msra.mxu0 %v2189_v58  ;;  %v2237_v26 = vld [vmem:[%s3738_s7 + $0x1b0] sm:$0xf] }
 0x127   : > { %1218 = vmatpush.msrb.mxu2 %v2128_v27  ;;  %1256 = vmatpush.msrb.mxu3 %v2142_v28 }
 0x128   : > { %1446 = vmatpush.msra.mxu0 %v2188_v63 }
 0x129   : > { %1219 = vmatpush.msrb.mxu2 %v2127_v29  ;;  %1257 = vmatpush.msrb.mxu3 %v2141_v30  ;;  %v2222_v29 = vld [vmem:[%s3737_s6 + $0x1a8] sm:$0xff] }
 0x12a   : > { %1447 = vmatpush.msra.mxu0 %v2187_v2  ;;  %v2236_v30 = vld [vmem:[%s3738_s7 + $0x1a8] sm:$0xff] }
 0x12b   : > { %1220 = vmatpush.msrb.mxu2 %v2126_v31  ;;  %1258 = vmatpush.msrb.mxu3 %v2140_v32  ;;  %v2221_v32 = vld [vmem:[%s3737_s6 + $0x1a0] sm:$0xff] }
 0x12c   : > { %1448 = vmatpush.msra.mxu0 %v2186_v59 }
 0x12d   : > { %1221 = vmatpush.msrb.mxu2 %v2125_v33  ;;  %1259 = vmatpush.msrb.mxu3 %v2139_v36  ;;  %v2235_v33 = vld [vmem:[%s3738_s7 + $0x1a0] sm:$0xff] }
 0x12e   : > { %1449 = vmatpush.msra.mxu0 %v2185_v11  ;;  %v1664_v11 = vld [vmem:[%s3742_s11 + $0x48] sm:$0xff] }
 0x12f   : > { %1222 = vmatpush.msrb.mxu2 %v2124_v41  ;;  %1260 = vmatpush.msrb.mxu3 %v2138_v42  ;;  %v2219_v41 = vld [vmem:[%s3737_s6 + $0x190] sm:$0xff] }
 0x130   : > { %v2233_v42 = vld [vmem:[%s3738_s7 + $0x190] sm:$0xff] }
 0x131   : > { %1223 = vmatpush.msrb.mxu2 %v2123_v47  ;;  %1261 = vmatpush.msrb.mxu3 %v2137_v48  ;;  %v2232_v47 = vld [vmem:[%s3738_s7 + $0x188] sm:$0xff] }
 0x133   : > { %2168 = vmatpush.msk.msra.mxu2 %vm974_vm4, %v2167_v34  ;;  %2182 = vmatpush.msk.msra.mxu3 %vm974_vm4, %v2181_v44  ;;  %v2217_v34 = vld [vmem:[%s3737_s6 + $0x180] sm:$0xff] }
 0x134   : > { %v2231_v44 = vld [vmem:[%s3738_s7 + $0x180] sm:$0xff] }
 0x135   : > { %1353 = vmatpush.msra.mxu2 %v2166_v45  ;;  %1391 = vmatpush.msra.mxu3 %v2180_v52  ;;  %v2230_v45 = vld [vmem:[%s3738_s7 + $0x178] sm:$0xff]  ;;  %v2215_v52 = vld [vmem:[%s3737_s6 + $0x170] sm:$0xff] }
 0x137   : > { %1354 = vmatpush.msra.mxu2 %v2165_v56  ;;  %1392 = vmatpush.msra.mxu3 %v2179_v38  ;;  %v2228_v56 = vld [vmem:[%s3738_s7 + $0x168] sm:$0xff]  ;;  %v2213_v38 = vld [vmem:[%s3737_s6 + $0x160] sm:$0xff] }
 0x139   : > { %1355 = vmatpush.msra.mxu2 %v2164_v57  ;;  %1393 = vmatpush.msra.mxu3 %v2178_v51 }
 0x13b   : > { %1356 = vmatpush.msra.mxu2 %v2163_v61  ;;  %1394 = vmatpush.msra.mxu3 %v2177_v62 }
 0x13d   : > { %1357 = vmatpush.msra.mxu2 %v2162_v53  ;;  %1395 = vmatpush.msra.mxu3 %v2176_v1 }
 0x13f   : > { %1358 = vmatpush.msra.mxu2 %v2161_v5  ;;  %1396 = vmatpush.msra.mxu3 %v2175_v6 }
 0x141   : > { %1359 = vmatpush.msra.mxu2 %v2160_v8  ;;  %1397 = vmatpush.msra.mxu3 %v2174_v9 }
 0x143   : > { %1360 = vmatpush.msra.mxu2 %v2159_v4  ;;  %1398 = vmatpush.msra.mxu3 %v2173_v13 }
 0x145   : > { %1361 = vmatpush.msra.mxu2 %v2158_v14  ;;  %1399 = vmatpush.msra.mxu3 %v2172_v15  ;;  %v1662_v14 = vld [vmem:[%s3742_s11 + $0x38] sm:$0xff] }
 0x146   : > { %v2255_v15 = vld [vmem:[%s3742_s11 + $0x98] sm:$0xff] }
 0x147   : > { %1362 = vmatpush.msra.mxu2 %v2157_v16  ;;  %1400 = vmatpush.msra.mxu3 %v2171_v17 }
 0x19f   : > { %v1122_v18 = vpop.f32.mrf.mxu2  ;;  %v1153_v10 = vpop.f32.mrf.mxu3 }
 0x1a0   : > { %v3327_v19 = vmax.f32 %v1122_v18, %v1153_v10  ;;  %v2254_v18 = vld [vmem:[%s3742_s11 + $0x90] sm:$0xff] }
 0x1a2   : > { %2152 = vmatmul.msk.f32.vlgmr.msrb.gmra.mxu0 %vm1200_vm6, %v3327_v19  ;;  %2155 = vmatmul.msk.f32.vlgmr.msrb.gmra.mxu1 %vm1200_vm6, %v3327_v19  ;;  %v1197_v23 = vrot.slane %v3327_v19, 1  ;;  %v1424_v31 = vrot.slane %v3327_v19, 3  ;;  %v1337_v48 = vrot.slane %v3327_v19, 2  ;;  %v1511_v57 = vrot.slane %v3327_v19, 4 }
 0x1a7   : > { %v1125_v20 = vpop.f32.mrf.mxu2  ;;  %v1156_v21 = vpop.f32.mrf.mxu3 }
 0x1a8   : > { %v3333_v22 = vmax.f32 %v1125_v20, %v1156_v21  ;;  %v1661_v20 = vld [vmem:[%s3742_s11 + $0x30] sm:$0xff]  ;;  %v2253_v21 = vld [vmem:[%s3742_s11 + $0x88] sm:$0xff] }
 0x1aa   : > { %2153 = vmatmul.msk.f32.gmra.mxu0 %vm1200_vm6, %v3333_v22  ;;  %2156 = vmatmul.msk.f32.gmra.mxu1 %vm1200_vm6, %v3333_v22  ;;  %v1198_v24 = vrot.slane %v3333_v22, 1  ;;  %v1425_v28 = vrot.slane %v3333_v22, 3  ;;  %v1338_v43 = vrot.slane %v3333_v22, 2  ;;  %v1512_v50 = vrot.slane %v3333_v22, 4 }
 0x1ac   : > { %v1199_v27 = vsel %vm591_vm0, %v1197_v23, %v1198_v24  ;;  %v1426_v36 = vsel %vm866_vm3, %v1424_v31, %v1425_v28  ;;  %v1339_v49 = vsel %vm758_vm2, %v1337_v48, %v1338_v43  ;;  %v1513_v51 = vsel %vm974_vm4, %v1511_v57, %v1512_v50  ;;  %v1657_v48 = vld [vmem:[%s3742_s11 + $0x10] sm:$0xff]  ;;  %v2266_v57 = vld [vmem:[%s3742_s11 + $0xe8] sm:$0xff] }
 0x1ad   : > { %2135 = vmatmul.msk.f32.vlgmr.msrb.gmra.mxu2 %vm1200_vm6, %v1199_v27  ;;  %2149 = vmatmul.msk.f32.vlgmr.msrb.gmra.mxu3 %vm1200_vm6, %v1199_v27 }
 0x1ae   : > { %2224 = vmatpush.msk.msrb.mxu2 %vm974_vm4, %v2223_v25  ;;  %2238 = vmatpush.msk.msrb.mxu3 %vm974_vm4, %v2237_v26  ;;  %v1660_v26 = vld [vmem:[%s3742_s11 + $0x28] sm:$0xff] }
 0x1af   : > { %1745 = vmatpush.msrb.mxu0 %v2266_v57  ;;  %v1880_v57 = vld [vmem:[%s3746_s15 + $0x58] sm:$0xff] }
 0x1b0   : > { %1527 = vmatpush.msrb.mxu2 %v2222_v29  ;;  %1565 = vmatpush.msrb.mxu3 %v2236_v30  ;;  %v1659_v30 = vld [vmem:[%s3742_s11 + $0x20] sm:$0xff] }
 0x1b2   : > { %2197 = vmatmul.msk.f32.vlgmr.msra.gmra.mxu0 %vm1200_vm6, %v1426_v36  ;;  %2211 = vmatmul.msk.f32.vlgmr.msra.gmra.mxu1 %vm1200_vm6, %v1426_v36 }
 0x1b3   : > { %1528 = vmatpush.msrb.mxu2 %v2221_v32  ;;  %1566 = vmatpush.msrb.mxu3 %v2235_v33 }
 0x1b5   : > { %2136 = vmatmul.msk.f32.gmra.mxu2 %vm1200_vm6, %v1198_v24  ;;  %2150 = vmatmul.msk.f32.gmra.mxu3 %vm1200_vm6, %v1198_v24 }
 0x1b6   : > { %1529 = vmatpush.msrb.mxu2 %v2220_v37  ;;  %1567 = vmatpush.msrb.mxu3 %v2234_v40  ;;  %v1658_v37 = vld [vmem:[%s3742_s11 + $0x18] sm:$0xff] }
 0x1b8   : > { %1530 = vmatpush.msrb.mxu2 %v2219_v41  ;;  %1568 = vmatpush.msrb.mxu3 %v2233_v42 }
 0x1ba   : > { %2198 = vmatmul.msk.f32.gmra.mxu0 %vm1200_vm6, %v1425_v28  ;;  %2212 = vmatmul.msk.f32.gmra.mxu1 %vm1200_vm6, %v1425_v28  ;;  %v2333_v28 = vld [vmem:[%s3739_s8] ss:$0 sm:$0xff] }
 0x1bb   : > { %1531 = vmatpush.msrb.mxu2 %v2218_v46  ;;  %1569 = vmatpush.msrb.mxu3 %v2232_v47 }
 0x1bd   : > { %2169 = vmatmul.msk.f32.vlgmr.msra.gmra.mxu2 %vm1200_vm6, %v1339_v49  ;;  %2183 = vmatmul.msk.f32.vlgmr.msra.gmra.mxu3 %vm1200_vm6, %v1339_v49  ;;  %v1656_v49 = vld [vmem:[%s3742_s11 + $0x8] sm:$0xff] }
 0x1be   : > { %1532 = vmatpush.msrb.mxu2 %v2217_v34  ;;  %1570 = vmatpush.msrb.mxu3 %v2231_v44 }
 0x1c0   : > { %1533 = vmatpush.msrb.mxu2 %v2216_v35  ;;  %1571 = vmatpush.msrb.mxu3 %v2230_v45 }
 0x1c2   : > { %1534 = vmatpush.msrb.mxu2 %v2215_v52  ;;  %1572 = vmatpush.msrb.mxu3 %v2229_v54 }
 0x1c4   : > { %1535 = vmatpush.msrb.mxu2 %v2214_v55  ;;  %1573 = vmatpush.msrb.mxu3 %v2228_v56  ;;  %v1655_v55 = vld [vmem:[%s3742_s11] sm:$0xff] }
 0x1c5   : > { %2170 = vmatmul.msk.f32.gmra.mxu2 %vm1200_vm6, %v1338_v43  ;;  %2184 = vmatmul.msk.f32.gmra.mxu3 %vm1200_vm6, %v1338_v43 }
 0x1c6   : > { %1536 = vmatpush.msrb.mxu2 %v2213_v38  ;;  %1574 = vmatpush.msrb.mxu3 %v2227_v39  ;;  %v1600_v39 = vld [vmem:[%s3740_s9] sm:$0x1f] }
 0x1c8   : > { %1675 = vmatpush.msra.mxu2 %v1664_v11  ;;  %1710 = vmatpush.msra.mxu3 %v2255_v15  ;;  %v2261_v11 = vld [vmem:[%s3742_s11 + $0xc0] sm:$0xff]  ;;  %v2284_v15 = vld [vmem:[%s3742_s11 + $0x168] sm:$0xff] }
 0x1ca   : > { %1676 = vmatpush.msra.mxu2 %v1663_v12  ;;  %1711 = vmatpush.msra.mxu3 %v2254_v18  ;;  %v2272_v12 = vld [vmem:[%s3742_s11 + $0x110] sm:$0xff]  ;;  %v2247_v18 = vld [vmem:[%s3742_s11 + $0x58] sm:$0xff] }
 0x1cc   : > { %1677 = vmatpush.msra.mxu2 %v1662_v14  ;;  %1712 = vmatpush.msra.mxu3 %v2253_v21  ;;  %v2248_v14 = vld [vmem:[%s3742_s11 + $0x60] sm:$0xff]  ;;  %v2246_v21 = vld [vmem:[%s3742_s11 + $0x50] sm:$0xff] }
 0x1cd   : > { %2225 = vmatmul.msk.f32.vlgmr.msrb.gmra.mxu2 %vm1200_vm6, %v1513_v51  ;;  %2239 = vmatmul.msk.f32.vlgmr.msrb.gmra.mxu3 %vm1200_vm6, %v1513_v51  ;;  %v2277_v51 = vld [vmem:[%s3742_s11 + $0x138] sm:$0xff] }
 0x1ce   : > { %1678 = vmatpush.msra.mxu2 %v1661_v20  ;;  %v2269_v20 = vld [vmem:[%s3742_s11 + $0xf8] sm:$0xff] }
 0x1d0   : > { %1679 = vmatpush.msra.mxu2 %v1660_v26  ;;  %v2280_v26 = vld [vmem:[%s3742_s11 + $0x148] sm:$0xff] }
 0x1d2   : > { %1680 = vmatpush.msra.mxu2 %v1659_v30  ;;  %v1844_v30 = vld [vmem:[%s3744_s13 + $0x68] sm:$0xff] }
 0x1d4   : > { %1681 = vmatpush.msra.mxu2 %v1658_v37  ;;  %v1839_v37 = vld [vmem:[%s3744_s13 + $0x40] sm:$0xff] }
 0x1d5   : > { %2226 = vmatmul.msk.f32.gmra.mxu2 %vm1200_vm6, %v1512_v50  ;;  %2240 = vmatmul.msk.f32.gmra.mxu3 %vm1200_vm6, %v1512_v50  ;;  %v1629_v50 = vld [vmem:[%s3741_s10] sm:$0x1f] }
 0x1d6   : > { %1682 = vmatpush.msra.mxu2 %v1657_v48 }
 0x1d8   : > { %1683 = vmatpush.msra.mxu2 %v1656_v49  ;;  %v1836_v49 = vld [vmem:[%s3744_s13 + $0x28] sm:$0xff] }
 0x1da   : > { %1684 = vmatpush.msra.mxu2 %v1655_v55  ;;  %v1831_v55 = vld [vmem:[%s3744_s13] sm:$0xff] }
 0x21f   : > { %v1293_v61 = vpop.f32.mrf.mxu0  ;;  %v1319_v62 = vpop.f32.mrf.mxu1 }
 0x227   : > { %v1296_v2 = vpop.f32.mrf.mxu0  ;;  %v1322_v3 = vpop.f32.mrf.mxu1 }
 0x22f   : > { %v1451_v59 = vpop.f32.mrf.mxu0  ;;  %v1489_v7 = vpop.f32.mrf.mxu1 }
 0x230   : > { %v1225_v58 = vpop.f32.mrf.mxu2  ;;  %v1263_v60 = vpop.f32.mrf.mxu3 }
 0x231   : > { %v1294_v8 = vadd.f32 %v1293_v61, %v1225_v58  ;;  %v1320_v9 = vadd.f32 %v1319_v62, %v1263_v60  ;;  %v2265_v58 = vld [vmem:[%s3742_s11 + $0xe0] sm:$0xff]  ;;  %v2276_v60 = vld [vmem:[%s3742_s11 + $0x130] sm:$0xff]  ;;  %v2264_v61 = vld [vmem:[%s3742_s11 + $0xd8] sm:$0xff] }
 0x232   : > { %1746 = vmatpush.msrb.mxu0 %v2265_v58  ;;  %v2275_v62 = vld [vmem:[%s3742_s11 + $0x128] sm:$0xff] }
 0x233   : > { %v1878_v58 = vld [vmem:[%s3746_s15 + $0x48] sm:$0xff] }
 0x234   : > { %1747 = vmatpush.msrb.mxu0 %v2264_v61  ;;  %v1876_v61 = vld [vmem:[%s3746_s15 + $0x38] sm:$0xff] }
 0x237   : > { %v1454_v31 = vpop.f32.mrf.mxu0  ;;  %v1492_v32 = vpop.f32.mrf.mxu1 }
 0x238   : > { %v1228_v63 = vpop.f32.mrf.mxu2  ;;  %v1266_v0 = vpop.f32.mrf.mxu3 }
 0x239   : > { %v1297_v10 = vadd.f32 %v1296_v2, %v1228_v63  ;;  %v1323_v19 = vadd.f32 %v1322_v3, %v1266_v0  ;;  %v2252_v63 = vld [vmem:[%s3742_s11 + $0x80] sm:$0xff]  ;;  %v2288_v0 = vld [vmem:[%s3742_s11 + $0x188] sm:$0xff]  ;;  %v2250_v3 = vld [vmem:[%s3742_s11 + $0x70] sm:$0xff] }
 0x23a   : > { %1713 = vmatpush.msra.mxu3 %v2252_v63  ;;  %1815 = vmatpush.msrb.mxu2 %v2288_v0  ;;  %v2287_v2 = vld [vmem:[%s3742_s11 + $0x180] sm:$0xff]  ;;  %v1874_v0 = vld [vmem:[%s3746_s15 + $0x28] sm:$0xff] }
 0x23b   : > { %v1654_v63 = vld [vmem:[%s3743_s12] sm:$0x1] }
 0x23c   : > { %1816 = vmatpush.msrb.mxu2 %v2287_v2  ;;  %v1873_v2 = vld [vmem:[%s3746_s15 + $0x20] sm:$0xff] }
 0x240   : > { %v1364_v53 = vpop.f32.mrf.mxu2  ;;  %v1402_v1 = vpop.f32.mrf.mxu3 }
 0x241   : > { %v1408_v4 = vadd.f32 %v1364_v53, %v1294_v8  ;;  %v1410_v13 = vadd.f32 %v1402_v1, %v1320_v9  ;;  %v2263_v53 = vld [vmem:[%s3742_s11 + $0xd0] sm:$0xff]  ;;  %v2251_v1 = vld [vmem:[%s3742_s11 + $0x78] sm:$0xff]  ;;  %v2249_v8 = vld [vmem:[%s3742_s11 + $0x68] sm:$0xff] }
 0x242   : > { %1748 = vmatpush.msrb.mxu0 %v2263_v53  ;;  %1714 = vmatpush.msra.mxu3 %v2251_v1  ;;  %v2285_v9 = vld [vmem:[%s3742_s11 + $0x170] sm:$0xff] }
 0x243   : > { %v1495_v24 = vadd.f32 %v1451_v59, %v1408_v4  ;;  %v1497_v25 = vadd.f32 %v1489_v7, %v1410_v13  ;;  %v2274_v59 = vld [vmem:[%s3742_s11 + $0x120] sm:$0xff]  ;;  %v2273_v7 = vld [vmem:[%s3742_s11 + $0x118] sm:$0xff]  ;;  %v2271_v13 = vld [vmem:[%s3742_s11 + $0x108] sm:$0xff] }
 0x244   : > { %1715 = vmatpush.msra.mxu3 %v2250_v3  ;;  %v2260_v4 = vld [vmem:[%s3742_s11 + $0xb8] sm:$0xff] }
 0x246   : > { %1716 = vmatpush.msra.mxu3 %v2249_v8 }
 0x248   : > { %v1367_v5 = vpop.f32.mrf.mxu2  ;;  %v1405_v6 = vpop.f32.mrf.mxu3  ;;  %1717 = vmatpush.msra.mxu3 %v2248_v14  ;;  %v1870_v14 = vld [vmem:[%s3746_s15 + $0x8] sm:$0xff] }
 0x249   : > { %v1409_v22 = vadd.f32 %v1367_v5, %v1297_v10  ;;  %v1411_v23 = vadd.f32 %v1405_v6, %v1323_v19  ;;  %v2286_v5 = vld [vmem:[%s3742_s11 + $0x178] sm:$0xff]  ;;  %v2262_v6 = vld [vmem:[%s3742_s11 + $0xc8] sm:$0xff]  ;;  %v2283_v10 = vld [vmem:[%s3742_s11 + $0x160] sm:$0xff] }
 0x24a   : > { %1749 = vmatpush.msrb.mxu0 %v2262_v6  ;;  %1817 = vmatpush.msrb.mxu2 %v2286_v5  ;;  %v2258_v19 = vld [vmem:[%s3742_s11 + $0xa8] sm:$0xff]  ;;  %v1872_v6 = vld [vmem:[%s3746_s15 + $0x18] sm:$0xff] }
 0x24b   : > { %v1496_v33 = vadd.f32 %v1454_v31, %v1409_v22  ;;  %v1498_v36 = vadd.f32 %v1492_v32, %v1411_v23  ;;  %1718 = vmatpush.msra.mxu3 %v2247_v18  ;;  %v2282_v22 = vld [vmem:[%s3742_s11 + $0x158] sm:$0xff]  ;;  %v2257_v23 = vld [vmem:[%s3742_s11 + $0xa0] sm:$0xff] }
 0x24c   : > { %1750 = vmatpush.msrb.mxu0 %v2261_v11  ;;  %1818 = vmatpush.msrb.mxu2 %v2285_v9  ;;  %v1843_v31 = vld [vmem:[%s3744_s13 + $0x60] sm:$0xff]  ;;  %v1842_v32 = vld [vmem:[%s3744_s13 + $0x58] sm:$0xff] }
 0x24d   : > { %1719 = vmatpush.msra.mxu3 %v2246_v21 }
 0x24e   : > { %1751 = vmatpush.msrb.mxu0 %v2260_v4  ;;  %1819 = vmatpush.msrb.mxu2 %v2284_v15  ;;  %v1869_v15 = vld [vmem:[%s3746_s15] sm:$0xff] }
 0x250   : > { %v1538_v16 = vpop.f32.mrf.mxu2  ;;  %v1576_v17 = vpop.f32.mrf.mxu3  ;;  %1820 = vmatpush.msrb.mxu2 %v2283_v10 }
 0x251   : > { %v1582_v27 = vadd.f32 %v1538_v16, %v1495_v24  ;;  %v1584_v29 = vadd.f32 %v1576_v17, %v1497_v25  ;;  %v2259_v16 = vld [vmem:[%s3742_s11 + $0xb0] sm:$0xff]  ;;  %v2270_v17 = vld [vmem:[%s3742_s11 + $0x100] sm:$0xff] }
 0x252   : > { %1752 = vmatpush.msrb.mxu0 %v2259_v16  ;;  %1821 = vmatpush.msrb.mxu2 %v2282_v22  ;;  %v2268_v24 = vld [vmem:[%s3742_s11 + $0xf0] sm:$0xff]  ;;  %v1847_v16 = vld [vmem:[%s3745_s14] sm:$0x1] }
 0x253   : > { %v1590_v42 = vadd.f32 %v2333_v28, %v1582_v27  ;;  %v1594_v43 = vadd.f32 %v2333_v28, %v1584_v29  ;;  %v2281_v25 = vld [vmem:[%s3742_s11 + $0x150] sm:$0xff]  ;;  %v2279_v27 = vld [vmem:[%s3742_s11 + $0x140] sm:$0xff] }
 0x254   : > { %1753 = vmatpush.msrb.mxu0 %v2258_v19  ;;  %1822 = vmatpush.msrb.mxu2 %v2281_v25  ;;  %v1845_v29 = vld [vmem:[%s3744_s13 + $0x70] sm:$0xff]  ;;  %v1885_v19 = vld [vmem:[%s3775_s16] sm:$0x1] }
 0x255   : > { %v1592_v35 = vmax.f32 %v1590_v42, 0.0  ;;  %v1596_v45 = vmax.f32 %v1594_v43, 0.0 }
 0x256   : > { %1754 = vmatpush.msrb.mxu0 %v2257_v23  ;;  %1823 = vmatpush.msrb.mxu2 %v2280_v26 }
 0x257   : > { %v1598_v38 = vmax.f32 %v1592_v35, %v1596_v45  ;;  %v1835_v35 = vld [vmem:[%s3744_s13 + $0x20] sm:$0xff]  ;;  %v1834_v45 = vld [vmem:[%s3744_s13 + $0x18] sm:$0xff] }
 0x258   : > { %v1541_v40 = vpop.f32.mrf.mxu2  ;;  %v1579_v41 = vpop.f32.mrf.mxu3  ;;  %1824 = vmatpush.msrb.mxu2 %v2279_v27 }
 0x259   : > { %v1583_v46 = vadd.f32 %v1541_v40, %v1496_v33  ;;  %v1585_v47 = vadd.f32 %v1579_v41, %v1498_v36  ;;  %v1841_v33 = vld [vmem:[%s3744_s13 + $0x50] sm:$0xff]  ;;  %v1840_v36 = vld [vmem:[%s3744_s13 + $0x48] sm:$0xff]  ;;  %v1838_v41 = vld [vmem:[%s3744_s13 + $0x38] sm:$0xff] }
 0x25b   : > { %v1591_v34 = vadd.f32 %v2333_v28, %v1583_v46  ;;  %v1595_v44 = vadd.f32 %v2333_v28, %v1585_v47  ;;  %v1846_v28 = vld [vmem:[%s3744_s13 + $0x78] sm:$0xff] }
 0x25c   : > { %1848 = vmatpush.msrb.mxu3 %v1846_v28 }
 0x25d   : > { %v1593_v52 = vmax.f32 %v1591_v34, 0.0  ;;  %v1597_v54 = vmax.f32 %v1595_v44, 0.0  ;;  %v1837_v44 = vld [vmem:[%s3744_s13 + $0x30] sm:$0xff] }
 0x25e   : > { %1849 = vmatpush.msrb.mxu3 %v1845_v29 }
 0x25f   : > { %v1599_v56 = vmax.f32 %v1593_v52, %v1597_v54  ;;  %v1833_v52 = vld [vmem:[%s3744_s13 + $0x10] sm:$0xff]  ;;  %v1832_v54 = vld [vmem:[%s3744_s13 + $0x8] sm:$0xff] }
 0x260   : > { %1850 = vmatpush.msrb.mxu3 %v1844_v30 }
 0x261   : > { %2241 = vmatpush.msk.msrb.mxu1 %vm1605_vm7, %v1599_v56 }
 0x262   : > { %1851 = vmatpush.msrb.mxu3 %v1843_v31 }
 0x263   : > { %1624 = vmatpush.msrb.mxu1 %v1598_v38 }
 0x264   : > { %2242 = vmatmul.msk.f32.vlgmr.msrb.gmra.mxu1 %vm1601_vm8, %v1600_v39  ;;  %1852 = vmatpush.msrb.mxu3 %v1842_v32  ;;  %v1882_v39 = vld [vmem:[%s3746_s15 + $0x68] sm:$0xff] }
 0x265   : > { %2243 = vmatpush.msk.msra.mxu1 %vm1605_vm7, %v1599_v56  ;;  %v1884_v56 = vld [vmem:[%s3746_s15 + $0x78] sm:$0xff] }
 0x266   : > { %1853 = vmatpush.msrb.mxu3 %v1841_v33  ;;  %1886 = vmatpush.msra.mxu0 %v1884_v56 }
 0x267   : > { %1648 = vmatpush.msra.mxu1 %v1598_v38  ;;  %v1883_v38 = vld [vmem:[%s3746_s15 + $0x70] sm:$0xff] }
 0x268   : > { %1854 = vmatpush.msrb.mxu3 %v1840_v36  ;;  %1887 = vmatpush.msra.mxu0 %v1883_v38 }
 0x269   : > { %1780 = vmatpush.msrb.mxu1 %v2277_v51  ;;  %v1879_v51 = vld [vmem:[%s3746_s15 + $0x50] sm:$0xff] }
 0x26a   : > { %1855 = vmatpush.msrb.mxu3 %v1839_v37  ;;  %1888 = vmatpush.msra.mxu0 %v1882_v39 }
 0x26b   : > { %1781 = vmatpush.msrb.mxu1 %v2276_v60  ;;  %v1877_v60 = vld [vmem:[%s3746_s15 + $0x40] sm:$0xff] }
 0x26c   : > { %2244 = vmatmul.msk.f32.vlgmr.msra.gmra.mxu1 %vm1601_vm8, %v1629_v50  ;;  %1856 = vmatpush.msrb.mxu3 %v1838_v41  ;;  %v1881_v50 = vld [vmem:[%s3746_s15 + $0x60] sm:$0xff] }
 0x26d   : > { %1782 = vmatpush.msrb.mxu1 %v2275_v62  ;;  %1889 = vmatpush.msra.mxu0 %v1881_v50  ;;  %v1875_v62 = vld [vmem:[%s3746_s15 + $0x30] sm:$0xff] }
 0x26e   : > { %1857 = vmatpush.msrb.mxu3 %v1837_v44 }
 0x26f   : > { %1783 = vmatpush.msrb.mxu1 %v2274_v59  ;;  %1890 = vmatpush.msra.mxu0 %v1880_v57 }
 0x270   : > { %1858 = vmatpush.msrb.mxu3 %v1836_v49 }
 0x271   : > { %1784 = vmatpush.msrb.mxu1 %v2273_v7  ;;  %1891 = vmatpush.msra.mxu0 %v1879_v51 }
 0x272   : > { %1859 = vmatpush.msrb.mxu3 %v1835_v35 }
 0x273   : > { %1785 = vmatpush.msrb.mxu1 %v2272_v12  ;;  %1892 = vmatpush.msra.mxu0 %v1878_v58 }
 0x274   : > { %1860 = vmatpush.msrb.mxu3 %v1834_v45 }
 0x275   : > { %1786 = vmatpush.msrb.mxu1 %v2271_v13  ;;  %1893 = vmatpush.msra.mxu0 %v1877_v60  ;;  %v1871_v13 = vld [vmem:[%s3746_s15 + $0x10] sm:$0xff] }
 0x276   : > { %1861 = vmatpush.msrb.mxu3 %v1833_v52 }
 0x277   : > { %1787 = vmatpush.msrb.mxu1 %v2270_v17  ;;  %1894 = vmatpush.msra.mxu0 %v1876_v61 }
 0x278   : > { %1862 = vmatpush.msrb.mxu3 %v1832_v54 }
 0x279   : > { %1788 = vmatpush.msrb.mxu1 %v2269_v20  ;;  %1895 = vmatpush.msra.mxu0 %v1875_v62 }
 0x27a   : > { %1863 = vmatpush.msrb.mxu3 %v1831_v55 }
 0x27b   : > { %1789 = vmatpush.msrb.mxu1 %v2268_v24  ;;  %1896 = vmatpush.msra.mxu0 %v1874_v0 }
 0x27d   : > { %1897 = vmatpush.msra.mxu0 %v1873_v2 }
 0x27f   : > { %1898 = vmatpush.msra.mxu0 %v1872_v6 }
 0x281   : > { %1899 = vmatpush.msra.mxu0 %v1871_v13 }
 0x283   : > { %1900 = vmatpush.msra.mxu0 %v1870_v14 }
 0x285   : > { %1901 = vmatpush.msra.mxu0 %v1869_v15 }
 0x2e1   : > { %v1626_v40 = vpop.f32.mrf.mxu1 }
 0x2e9   : > { %v1650_v42 = vpop.f32.mrf.mxu1 }
 0x2ea   : > { %v1653_v43 = vmax.f32 %v1626_v40, %v1650_v42 }
 0x2ec   : > { %2245 = vmatmul.msk.f32.vlgmr.msra.gmra.mxu2 %vm1665_vm9, %v1653_v43  ;;  %v1701_v46 = vrot.slane %v1653_v43, 1  ;;  %v1736_v47 = vrot.slane %v1653_v43, 2  ;;  %v1771_v48 = vrot.slane %v1653_v43, 3  ;;  %v1806_v34 = vrot.slane %v1653_v43, 4 }
 0x2ee   : > { %2256 = vmatmul.msk.f32.vlgmr.msra.gmra.mxu3 %vm1665_vm9, %v1701_v46  ;;  %2267 = vmatmul.msk.f32.vlgmr.msrb.gmra.mxu0 %vm1665_vm9, %v1736_v47 }
 0x2ef   : > { %2278 = vmatmul.msk.f32.vlgmr.msrb.gmra.mxu1 %vm1665_vm9, %v1771_v48 }
 0x2f4   : > { %2289 = vmatmul.msk.f32.vlgmr.msrb.gmra.mxu2 %vm1665_vm9, %v1806_v34 }
 0x36b   : > { %v1756_v59 = vpop.f32.mrf.mxu0 }
 0x36c   : > { %v1791_v8 = vpop.f32.mrf.mxu1 }
 0x36f   : > { %v1686_v53 = vpop.f32.mrf.mxu2 }
 0x370   : > { %v1689_v1 = vadd.f32 %v1686_v53, %v1654_v63 }
 0x371   : > { %v1721_v3 = vpop.f32.mrf.mxu3 }
 0x372   : > { %v1724_v5 = vadd.f32 %v1721_v3, %v1689_v1 }
 0x374   : > { %v1759_v7 = vadd.f32 %v1756_v59, %v1724_v5 }
 0x376   : > { %v1794_v9 = vadd.f32 %v1791_v8, %v1759_v7 }
 0x377   : > { %v1826_v11 = vpop.f32.mrf.mxu2 }
 0x378   : > { %v1829_v12 = vadd.f32 %v1826_v11, %v1794_v9 }
 0x37a   : > { %v1830_v4 = vmax.f32 %v1829_v12, 0.0 }
 0x37c   : > { %1864 = vmatmul.f32.vlgmr.msrb.gmra.mxu3 %v1830_v4 }
 0x3ff   : > { %v1865_v17 = vpop.f32.mrf.mxu3 }
 0x400   : > { %v1866_v18 = vadd.f32 %v1865_v17, %v1847_v16 }
 0x402   : > { %v1868_v10 = vmax.f32 %v1866_v18, 0.0 }
 0x404   : > { %1902 = vmatmul.f32.vlgmr.msra.gmra.mxu0 %v1868_v10 }
 0x481   : > { %v1903_v20 = vpop.f32.mrf.mxu0 }
 0x482   : > { %v1904_v21 = vadd.f32 %v1903_v20, %v1885_v19 }
 0x484   : > { %1906 = vst [vmem:[%s540_s30] sm:$0x1] %v1904_v21 }
 0x485   : > { %2361 = shalt.err (!%p2358_p3)
}
 0x486   : > { %2293 = dma.vmem_to_hbm [thread:$0]  (%p2526_p5), %s1919_s19, 16, %s1921_s27, %s1908_s18  }
 0x487 PF: > { %s3776_s24 = sld [smem:[#allocation7_spill]] }
 0x488   : > { %s3777_s22 = sld [smem:[#allocation5_spill]] }
 0x48d   : > { %p2299_p4 = scmp.ge.s32.totalorder %s3776_s24, 2 }
 0x48e   : > { %s1932_s30 = sand.u32 1, %s3777_s22  }
 0x48f   : > { %p2296_p7 = pnand %p2299_p4, %p2530_p6  ;;  %s1933_s28 = scalar_lea.sflag [#allocation3], %s1932_s30 }
 0x491   : > { %p2297_p8 = pneg %p2296_p7 }
 0x493   : > { %2379 = dma.done.wait (%p2297_p8), %s1933_s28, 16  }
 0x494   : > { %2381 = vsyncadd (%p2297_p8), %s1933_s28, 4294967280  ;;  %s3779_s27 = sld [smem:[#allocation8_spill]]  ;;  %s3782_s24 = smov %s2388_s25 }
 0x495   : > { %s3780_s2 = sld [smem:[#allocation6_spill]] }
 0x496   : > { %s3781_s26 = sld [smem:[#allocation9_spill]] }
 0x49a   : > { %p27_p9 = scmp.ge.s32.totalorder %s3779_s27, 4  }
 0x49b   : > { %s3783_s25 = smov %s3780_s2 }
 0x49c   :  { %29 = sbr.rel (!%p27_p9) target bundleno = 8 (0x8), region = 143 }
 0x4a1   :  { %1938 = vsyncpa [#allocation3], 1 }
 0x4a2   :  { %1940 = vsyncpa [#allocation3 + $0x1], 1 }

</bundles_post_ra>
